<compile_context>
chip_gen: v7x
topology: tpu7x:2x2x1
jax: 0.10.0
libtpu: 0.0.40
codegen_flags: <defaults>
</compile_context>

<pallas_src>
import numpy as np
import jax
import jax.numpy as jnp
from jax.experimental import pallas as pl
from jax.experimental.pallas import tpu as pltpu

K = 3               # k nearest neighbors
EMB = 128           # EMBEDDING_SIZE
H1 = 256            # conv1 out
H2 = 128            # conv2 out
MLP1 = 64           # linear4 out
NCLS = 3            # linear5 out
LEAKY_SLOPE = 0.01  # F.leaky_relu default
_BIG = 3.0e38       # "infinity" sentinel for masked-min selection


# ---------------------------------------------------------------- fused forward kernel
def _gnn_fused_kernel(x_ref, invm_ref, mean_ref,
                      w1t_ref, b1_ref, w2t_ref, b2_ref,
                      w4t_ref, b4_ref, w5t_ref, b5_ref, o_ref):
    Bt, P, D = x_ref.shape
    N = Bt * P                                    # packed node count
    x = x_ref[...].reshape(N, D)                  # (N, EMB) f32, Bt graphs packed

    invalid = invm_ref[...] > 0.5                 # (N, N): cross-graph or diagonal
    ri = jax.lax.broadcasted_iota(jnp.int32, (N, N), 0)
    ci = jax.lax.broadcasted_iota(jnp.int32, (N, N), 1)
    eye = (ri == ci).astype(jnp.float32)          # self-loops
    rif = ri.astype(jnp.float32)                  # float row indices for tie-breaking

    def knn_adj(feat):
        """Block-diagonal self-loop adjacency A[target, source] + D^{-1/2}.

        Selection runs per COLUMN u (source node): score[v, u] = ||v||^2 - 2 v.u
        is rank-equivalent (within a column) to squared euclidean distance, so
        the chosen neighbors match cdist + topk(largest=False)[:, 1:] per graph.
        Cross-graph and self entries are masked with _BIG, so packing Bt graphs
        into one (N, N) score matrix keeps the per-graph kNN structure exact.
        """
        sq = jnp.sum(feat * feat, axis=-1, keepdims=True)                   # (N, 1)
        gram = jax.lax.dot_general(                                          # (N, N), no f.T copy
            feat, feat, dimension_numbers=(((1,), (1,)), ((), ())),
            preferred_element_type=jnp.float32)
        s = jnp.where(invalid, _BIG, sq - 2.0 * gram)
        nbr = jnp.zeros((N, N), jnp.float32)      # nbr[v, u] = 1  <=>  edge u -> v
        for _ in range(K):                        # 3 masked-min passes == top-3
            m = jnp.min(s, axis=0, keepdims=True)                           # (1, N)
            cand = s <= m
            # ties broken by smallest node index (matches stable sort behavior)
            sel_row = jnp.min(jnp.where(cand, rif, float(N)),
                              axis=0, keepdims=True)                        # (1, N)
            sel = rif == sel_row                                            # one hit per column
            nbr = nbr + sel.astype(jnp.float32)
            s = jnp.where(sel, _BIG, s)
        adj = nbr + eye                           # add_remaining_self_loops
        deg = jnp.sum(adj, axis=-1, keepdims=True)                          # (N, 1) in-deg + 1
        return adj, jax.lax.rsqrt(deg)

    def gcn(feat, wt, b):
        """leaky_relu( D^-1/2 (A+I) D^-1/2 (feat @ Wt) + b )  (block-diag packed)."""
        adj, dinv = knn_adj(feat)
        # projection on the MXU in bf16, accumulate in f32
        h = jnp.dot(feat.astype(jnp.bfloat16), wt,
                    preferred_element_type=jnp.float32)                     # (N, Dout)
        # adj entries are exactly {0,1} -> lossless bf16; keeps aggregation on
        # the single-pass bf16 MXU path. Both D^-1/2 factors fold into (N,1)
        # row scalings, so no transposes are needed.
        agg = dinv * jnp.dot(adj.astype(jnp.bfloat16),
                             (dinv * h).astype(jnp.bfloat16),
                             preferred_element_type=jnp.float32)
        out = agg + b
        return jnp.where(out >= 0.0, out, LEAKY_SLOPE * out)                # F.leaky_relu

    h1 = gcn(x, w1t_ref[...], b1_ref[...])        # (N, 256)
    h2 = gcn(h1, w2t_ref[...], b2_ref[...])       # (N, 128)
    # third loop iteration of the PyTorch module only builds an unused graph (no-op)

    # head (vectorized over the Bt graphs of this tile):
    # node-mean via averaging matmul -> linear4 -> relu -> linear5 -> softmax
    xm = jnp.dot(mean_ref[...], h2, preferred_element_type=jnp.float32)     # (Bt, 128)
    h = jnp.dot(xm, w4t_ref[...], preferred_element_type=jnp.float32) + b4_ref[...]
    h = jnp.maximum(h, 0.0)
    logits = jnp.dot(h, w5t_ref[...], preferred_element_type=jnp.float32) + b5_ref[...]
    mx = jnp.max(logits, axis=-1, keepdims=True)
    e = jnp.exp(logits - mx)
    o_ref[0] = e / jnp.sum(e, axis=-1, keepdims=True)                       # (Bt, 3)


# ---------------------------------------------------------------- batch-tile sizing
def _pick_bt(B, P, target_rows=256):
    """Largest Bt with B % Bt == 0 and Bt*P <= target_rows.

    target_rows=256 matches the v6e/v7x 256-row MXU (128+ already saturates a
    v5e pass). When B > 1 we keep >= 2 grid steps so both v7x TensorCores get
    work (dimension_semantics=("parallel",) shards the grid across cores).
    """
    cap = max(1, target_rows // P)
    divisors = [d for d in range(1, B + 1) if B % d == 0 and d <= cap]
    proper = [d for d in divisors if d < B]
    if B > 1 and proper:
        return max(proper)
    return max(divisors)


# ---------------------------------------------------------------- wrapper
def gnn_forward(x, params):
    """x: (B, P, 128) f32.  Returns softmax class probabilities (B, 3)."""
    w1t, b1, w2t, b2, w4t, b4, w5t, b5 = params
    B, P, D = x.shape
    if D != EMB:
        raise ValueError(f"expected embedding size {EMB}, got {D}")
    if P < K + 1:
        # TODO(synk): min(k+1, num_points) fallback of the reference is not implemented
        raise ValueError(f"need at least {K + 1} nodes per graph, got {P}")

    Bt = _pick_bt(B, P)
    steps = B // Bt
    N = Bt * P

    # Static (shape-only) constants, baked at trace time:
    #   invmask[v,u] = 1  <=>  v,u in different graphs OR v == u   (mask for kNN)
    #   mean_mat[g,i] = 1/P if node i belongs to graph g           (node-mean matmul)
    gid = np.repeat(np.arange(Bt), P)
    inv_np = (gid[:, None] != gid[None, :]) | np.eye(N, dtype=bool)
    invmask = jnp.asarray(inv_np.astype(np.float32))
    mean_np = (gid[None, :] == np.arange(Bt)[:, None]).astype(np.float32) / float(P)
    mean_mat = jnp.asarray(mean_np)

    # Constant-index blocks (mask, mean matrix, weights, biases) are fetched
    # once: their block index never changes across grid steps, so the pipeline
    # does not re-DMA them per step.
    out = pl.pallas_call(
        _gnn_fused_kernel,
        out_shape=jax.ShapeDtypeStruct((steps, Bt, NCLS), jnp.float32),
        grid=(steps,),
        in_specs=[
            pl.BlockSpec((Bt, P, D), lambda g: (g, 0, 0)),    # x (Bt graphs / step)
            pl.BlockSpec((N, N), lambda g: (0, 0)),           # cross-graph/diag mask
            pl.BlockSpec((Bt, N), lambda g: (0, 0)),          # per-graph averaging matrix
            pl.BlockSpec((EMB, H1), lambda g: (0, 0)),        # w1ᵀ (bf16)
            pl.BlockSpec((1, H1), lambda g: (0, 0)),          # b1
            pl.BlockSpec((H1, H2), lambda g: (0, 0)),         # w2ᵀ (bf16)
            pl.BlockSpec((1, H2), lambda g: (0, 0)),          # b2
            pl.BlockSpec((H2, MLP1), lambda g: (0, 0)),       # w4ᵀ
            pl.BlockSpec((1, MLP1), lambda g: (0, 0)),        # b4
            pl.BlockSpec((MLP1, NCLS), lambda g: (0, 0)),     # w5ᵀ
            pl.BlockSpec((1, NCLS), lambda g: (0, 0)),        # b5
        ],
        out_specs=pl.BlockSpec((1, Bt, NCLS), lambda g: (g, 0, 0)),
        compiler_params=pltpu.CompilerParams(dimension_semantics=("parallel",)),
    )(x, invmask, mean_mat, w1t, b1, w2t, b2, w4t, b4, w5t, b5)
    return out.reshape(B, NCLS)


# ---------------------------------------------------------------- params (pre-transposed once)
def init_params(key):
    ks = jax.random.split(key, 8)

    def lin(kw, kb, fan_in, fan_out, w_dtype=jnp.float32):
        s = 1.0 / jnp.sqrt(fan_in)
        w = jax.random.uniform(kw, (fan_out, fan_in), jnp.float32, -s, s)
        b = jax.random.uniform(kb, (fan_out,), jnp.float32, -s, s)
        # transpose / reshape ONCE here so the jitted forward has no layout glue
        return jnp.asarray(w.T, w_dtype), b.reshape(1, fan_out)

    w1t, b1 = lin(ks[0], ks[1], EMB, H1, jnp.bfloat16)   # GCNConv 128 -> 256
    w2t, b2 = lin(ks[2], ks[3], H1, H2, jnp.bfloat16)    # GCNConv 256 -> 128
    w4t, b4 = lin(ks[4], ks[5], H2, MLP1)                # Linear 128 -> 64
    w5t, b5 = lin(ks[6], ks[7], MLP1, NCLS)              # Linear 64 -> 3
    return (w1t, b1, w2t, b2, w4t, b4, w5t, b5)


if __name__ == "__main__":
    key = jax.random.PRNGKey(0)
    kx, kp = jax.random.split(key)
    B, P = 8, 8                                    # 8 graphs, 8 nodes each
    x = jax.random.normal(kx, (B, P, EMB), jnp.float32)
    params = init_params(kp)

    out = jax.jit(gnn_forward)(x, params)
    out = jax.block_until_ready(out)

    assert out.shape == (B, NCLS)
    assert bool(jnp.all(jnp.isfinite(out)))
    assert bool(jnp.allclose(jnp.sum(out, axis=-1), 1.0, atol=1e-5))  # rows are softmax
    print("KERNEL_OK")
</pallas_src>

<mosaic_0001>
module attributes {stable_mosaic.version = 11 : i64} {
  func.func @_gnn_fused_kernel(%arg0: i32, %arg1: memref<4x8x128xf32, #tpu.memory_space<vmem>>, %arg2: memref<32x32xf32, #tpu.memory_space<vmem>>, %arg3: memref<4x32xf32, #tpu.memory_space<vmem>>, %arg4: memref<128x256xbf16, #tpu.memory_space<vmem>>, %arg5: memref<1x256xf32, #tpu.memory_space<vmem>>, %arg6: memref<256x128xbf16, #tpu.memory_space<vmem>>, %arg7: memref<1x128xf32, #tpu.memory_space<vmem>>, %arg8: memref<128x64xf32, #tpu.memory_space<vmem>>, %arg9: memref<1x64xf32, #tpu.memory_space<vmem>>, %arg10: memref<64x3xf32, #tpu.memory_space<vmem>>, %arg11: memref<1x3xf32, #tpu.memory_space<vmem>>, %arg12: memref<1x4x3xf32, #tpu.memory_space<vmem>>) attributes {dimension_semantics = [#tpu.dimension_semantics<parallel>], iteration_bounds = array<i64: 2>, scalar_prefetch = 0 : i64, scratch_operands = 0 : i64, tpu.core_type = #tpu.core_type<tc>, window_params = [{transform_indices = @transform_0, window_bounds = array<i64: 4, 8, 128>}, {pipeline_mode = #tpu.pipeline_mode<synchronous>, transform_indices = @transform_1, window_bounds = array<i64: 32, 32>}, {pipeline_mode = #tpu.pipeline_mode<synchronous>, transform_indices = @transform_2, window_bounds = array<i64: 4, 32>}, {pipeline_mode = #tpu.pipeline_mode<synchronous>, transform_indices = @transform_3, window_bounds = array<i64: 128, 256>}, {pipeline_mode = #tpu.pipeline_mode<synchronous>, transform_indices = @transform_4, window_bounds = array<i64: 1, 256>}, {pipeline_mode = #tpu.pipeline_mode<synchronous>, transform_indices = @transform_5, window_bounds = array<i64: 256, 128>}, {pipeline_mode = #tpu.pipeline_mode<synchronous>, transform_indices = @transform_6, window_bounds = array<i64: 1, 128>}, {pipeline_mode = #tpu.pipeline_mode<synchronous>, transform_indices = @transform_7, window_bounds = array<i64: 128, 64>}, {pipeline_mode = #tpu.pipeline_mode<synchronous>, transform_indices = @transform_8, window_bounds = array<i64: 1, 64>}, {pipeline_mode = #tpu.pipeline_mode<synchronous>, transform_indices = @transform_9, window_bounds = array<i64: 64, 3>}, {pipeline_mode = #tpu.pipeline_mode<synchronous>, transform_indices = @transform_10, window_bounds = array<i64: 1, 3>}, {transform_indices = @transform_11, window_bounds = array<i64: 1, 4, 3>}]} {
    %c0 = arith.constant 0 : index
    %c0_0 = arith.constant 0 : index
    %c0_1 = arith.constant 0 : index
    %0 = vector.load %arg1[%c0, %c0_0, %c0_1] : memref<4x8x128xf32, #tpu.memory_space<vmem>>, vector<4x8x128xf32>
    %1 = vector.shape_cast %0 : vector<4x8x128xf32> to vector<32x128xf32>
    %c0_2 = arith.constant 0 : index
    %c0_3 = arith.constant 0 : index
    %2 = vector.load %arg2[%c0_2, %c0_3] : memref<32x32xf32, #tpu.memory_space<vmem>>, vector<32x32xf32>
    %cst = arith.constant 5.000000e-01 : f32
    %3 = vector.broadcast %cst : f32 to vector<32x32xf32>
    %4 = arith.cmpf ogt, %2, %3 : vector<32x32xf32>
    %5 = tpu.iota {dimensions = array<i32: 0>} : vector<32x32xi32>
    %6 = tpu.iota {dimensions = array<i32: 1>} : vector<32x32xi32>
    %7 = arith.cmpi eq, %5, %6 : vector<32x32xi32>
    %8 = arith.extui %7 : vector<32x32xi1> to vector<32x32xi32>
    %9 = arith.sitofp %8 : vector<32x32xi32> to vector<32x32xf32>
    %10 = arith.sitofp %5 : vector<32x32xi32> to vector<32x32xf32>
    %c0_4 = arith.constant 0 : index
    %c0_5 = arith.constant 0 : index
    %11 = vector.load %arg4[%c0_4, %c0_5] : memref<128x256xbf16, #tpu.memory_space<vmem>>, vector<128x256xbf16>
    %c0_6 = arith.constant 0 : index
    %c0_7 = arith.constant 0 : index
    %12 = vector.load %arg5[%c0_6, %c0_7] : memref<1x256xf32, #tpu.memory_space<vmem>>, vector<1x256xf32>
    %13 = arith.mulf %1, %1 : vector<32x128xf32>
    %cst_8 = arith.constant dense<0.000000e+00> : vector<32xf32>
    %14 = vector.multi_reduction <add>, %13, %cst_8 [1] : vector<32x128xf32> to vector<32xf32>
    %15 = vector.shape_cast %14 : vector<32xf32> to vector<32x1xf32>
    %cst_9 = arith.constant dense<0.000000e+00> : vector<32x32xf32>
    %16 = tpu.matmul %1, %1, %cst_9 {dimension_numbers = #tpu.dot_dimension_numbers<[1], [1], [0], [0], [0, 0, 1, 0], [], []>} : vector<32x128xf32>, vector<32x128xf32>, vector<32x32xf32> -> vector<32x32xf32>
    %cst_10 = arith.constant 2.000000e+00 : f32
    %17 = vector.broadcast %cst_10 : f32 to vector<32x32xf32>
    %18 = arith.mulf %17, %16 : vector<32x32xf32>
    %19 = vector.broadcast %15 : vector<32x1xf32> to vector<32x32xf32>
    %20 = arith.subf %19, %18 : vector<32x32xf32>
    %cst_11 = arith.constant 3.000000e+38 : f32
    %21 = vector.broadcast %cst_11 : f32 to vector<32x32xf32>
    %22 = arith.select %4, %21, %20 : vector<32x32xi1>, vector<32x32xf32>
    %cst_12 = arith.constant 0.000000e+00 : f32
    %23 = vector.broadcast %cst_12 : f32 to vector<32x32xf32>
    %cst_13 = arith.constant dense<0x7F800000> : vector<32xf32>
    %24 = vector.multi_reduction <minimumf>, %22, %cst_13 [0] : vector<32x32xf32> to vector<32xf32>
    %25 = vector.shape_cast %24 : vector<32xf32> to vector<1x32xf32>
    %26 = vector.broadcast %25 : vector<1x32xf32> to vector<32x32xf32>
    %27 = arith.cmpf ole, %22, %26 : vector<32x32xf32>
    %cst_14 = arith.constant 3.200000e+01 : f32
    %28 = vector.broadcast %cst_14 : f32 to vector<32x32xf32>
    %29 = arith.select %27, %10, %28 : vector<32x32xi1>, vector<32x32xf32>
    %cst_15 = arith.constant dense<0x7F800000> : vector<32xf32>
    %30 = vector.multi_reduction <minimumf>, %29, %cst_15 [0] : vector<32x32xf32> to vector<32xf32>
    %31 = vector.shape_cast %30 : vector<32xf32> to vector<1x32xf32>
    %32 = vector.broadcast %31 : vector<1x32xf32> to vector<32x32xf32>
    %33 = arith.cmpf oeq, %10, %32 : vector<32x32xf32>
    %34 = arith.extui %33 : vector<32x32xi1> to vector<32x32xi32>
    %35 = arith.sitofp %34 : vector<32x32xi32> to vector<32x32xf32>
    %36 = arith.addf %23, %35 : vector<32x32xf32>
    %cst_16 = arith.constant 3.000000e+38 : f32
    %37 = vector.broadcast %cst_16 : f32 to vector<32x32xf32>
    %38 = arith.select %33, %37, %22 : vector<32x32xi1>, vector<32x32xf32>
    %cst_17 = arith.constant dense<0x7F800000> : vector<32xf32>
    %39 = vector.multi_reduction <minimumf>, %38, %cst_17 [0] : vector<32x32xf32> to vector<32xf32>
    %40 = vector.shape_cast %39 : vector<32xf32> to vector<1x32xf32>
    %41 = vector.broadcast %40 : vector<1x32xf32> to vector<32x32xf32>
    %42 = arith.cmpf ole, %38, %41 : vector<32x32xf32>
    %cst_18 = arith.constant 3.200000e+01 : f32
    %43 = vector.broadcast %cst_18 : f32 to vector<32x32xf32>
    %44 = arith.select %42, %10, %43 : vector<32x32xi1>, vector<32x32xf32>
    %cst_19 = arith.constant dense<0x7F800000> : vector<32xf32>
    %45 = vector.multi_reduction <minimumf>, %44, %cst_19 [0] : vector<32x32xf32> to vector<32xf32>
    %46 = vector.shape_cast %45 : vector<32xf32> to vector<1x32xf32>
    %47 = vector.broadcast %46 : vector<1x32xf32> to vector<32x32xf32>
    %48 = arith.cmpf oeq, %10, %47 : vector<32x32xf32>
    %49 = arith.extui %48 : vector<32x32xi1> to vector<32x32xi32>
    %50 = arith.sitofp %49 : vector<32x32xi32> to vector<32x32xf32>
    %51 = arith.addf %36, %50 : vector<32x32xf32>
    %cst_20 = arith.constant 3.000000e+38 : f32
    %52 = vector.broadcast %cst_20 : f32 to vector<32x32xf32>
    %53 = arith.select %48, %52, %38 : vector<32x32xi1>, vector<32x32xf32>
    %cst_21 = arith.constant dense<0x7F800000> : vector<32xf32>
    %54 = vector.multi_reduction <minimumf>, %53, %cst_21 [0] : vector<32x32xf32> to vector<32xf32>
    %55 = vector.shape_cast %54 : vector<32xf32> to vector<1x32xf32>
    %56 = vector.broadcast %55 : vector<1x32xf32> to vector<32x32xf32>
    %57 = arith.cmpf ole, %53, %56 : vector<32x32xf32>
    %cst_22 = arith.constant 3.200000e+01 : f32
    %58 = vector.broadcast %cst_22 : f32 to vector<32x32xf32>
    %59 = arith.select %57, %10, %58 : vector<32x32xi1>, vector<32x32xf32>
    %cst_23 = arith.constant dense<0x7F800000> : vector<32xf32>
    %60 = vector.multi_reduction <minimumf>, %59, %cst_23 [0] : vector<32x32xf32> to vector<32xf32>
    %61 = vector.shape_cast %60 : vector<32xf32> to vector<1x32xf32>
    %62 = vector.broadcast %61 : vector<1x32xf32> to vector<32x32xf32>
    %63 = arith.cmpf oeq, %10, %62 : vector<32x32xf32>
    %64 = arith.extui %63 : vector<32x32xi1> to vector<32x32xi32>
    %65 = arith.sitofp %64 : vector<32x32xi32> to vector<32x32xf32>
    %66 = arith.addf %51, %65 : vector<32x32xf32>
    %67 = arith.addf %66, %9 : vector<32x32xf32>
    %cst_24 = arith.constant dense<0.000000e+00> : vector<32xf32>
    %68 = vector.multi_reduction <add>, %67, %cst_24 [1] : vector<32x32xf32> to vector<32xf32>
    %69 = vector.shape_cast %68 : vector<32xf32> to vector<32x1xf32>
    %70 = math.rsqrt %69 : vector<32x1xf32>
    %71 = arith.truncf %1 : vector<32x128xf32> to vector<32x128xbf16>
    %cst_25 = arith.constant dense<0.000000e+00> : vector<32x256xf32>
    %72 = tpu.matmul %71, %11, %cst_25 {dimension_numbers = #tpu.dot_dimension_numbers<[1], [0], [0], [1], [0, 0, 1, 1], [], []>} : vector<32x128xbf16>, vector<128x256xbf16>, vector<32x256xf32> -> vector<32x256xf32>
    %73 = arith.truncf %67 : vector<32x32xf32> to vector<32x32xbf16>
    %74 = vector.broadcast %70 : vector<32x1xf32> to vector<32x256xf32>
    %75 = arith.mulf %74, %72 : vector<32x256xf32>
    %76 = arith.truncf %75 : vector<32x256xf32> to vector<32x256xbf16>
    %cst_26 = arith.constant dense<0.000000e+00> : vector<32x256xf32>
    %77 = tpu.matmul %73, %76, %cst_26 {dimension_numbers = #tpu.dot_dimension_numbers<[1], [0], [0], [1], [0, 0, 1, 1], [], []>} : vector<32x32xbf16>, vector<32x256xbf16>, vector<32x256xf32> -> vector<32x256xf32>
    %78 = vector.broadcast %70 : vector<32x1xf32> to vector<32x256xf32>
    %79 = arith.mulf %78, %77 : vector<32x256xf32>
    %80 = vector.broadcast %12 : vector<1x256xf32> to vector<32x256xf32>
    %81 = arith.addf %79, %80 : vector<32x256xf32>
    %cst_27 = arith.constant 0.000000e+00 : f32
    %82 = vector.broadcast %cst_27 : f32 to vector<32x256xf32>
    %83 = arith.cmpf oge, %81, %82 : vector<32x256xf32>
    %cst_28 = arith.constant 0.00999999977 : f32
    %84 = vector.broadcast %cst_28 : f32 to vector<32x256xf32>
    %85 = arith.mulf %84, %81 : vector<32x256xf32>
    %86 = arith.select %83, %81, %85 : vector<32x256xi1>, vector<32x256xf32>
    %c0_29 = arith.constant 0 : index
    %c0_30 = arith.constant 0 : index
    %87 = vector.load %arg6[%c0_29, %c0_30] : memref<256x128xbf16, #tpu.memory_space<vmem>>, vector<256x128xbf16>
    %c0_31 = arith.constant 0 : index
    %c0_32 = arith.constant 0 : index
    %88 = vector.load %arg7[%c0_31, %c0_32] : memref<1x128xf32, #tpu.memory_space<vmem>>, vector<1x128xf32>
    %89 = arith.mulf %86, %86 : vector<32x256xf32>
    %cst_33 = arith.constant dense<0.000000e+00> : vector<32xf32>
    %90 = vector.multi_reduction <add>, %89, %cst_33 [1] : vector<32x256xf32> to vector<32xf32>
    %91 = vector.shape_cast %90 : vector<32xf32> to vector<32x1xf32>
    %cst_34 = arith.constant dense<0.000000e+00> : vector<32x32xf32>
    %92 = tpu.matmul %86, %86, %cst_34 {dimension_numbers = #tpu.dot_dimension_numbers<[1], [1], [0], [0], [0, 0, 1, 0], [], []>} : vector<32x256xf32>, vector<32x256xf32>, vector<32x32xf32> -> vector<32x32xf32>
    %cst_35 = arith.constant 2.000000e+00 : f32
    %93 = vector.broadcast %cst_35 : f32 to vector<32x32xf32>
    %94 = arith.mulf %93, %92 : vector<32x32xf32>
    %95 = vector.broadcast %91 : vector<32x1xf32> to vector<32x32xf32>
    %96 = arith.subf %95, %94 : vector<32x32xf32>
    %cst_36 = arith.constant 3.000000e+38 : f32
    %97 = vector.broadcast %cst_36 : f32 to vector<32x32xf32>
    %98 = arith.select %4, %97, %96 : vector<32x32xi1>, vector<32x32xf32>
    %cst_37 = arith.constant 0.000000e+00 : f32
    %99 = vector.broadcast %cst_37 : f32 to vector<32x32xf32>
    %cst_38 = arith.constant dense<0x7F800000> : vector<32xf32>
    %100 = vector.multi_reduction <minimumf>, %98, %cst_38 [0] : vector<32x32xf32> to vector<32xf32>
    %101 = vector.shape_cast %100 : vector<32xf32> to vector<1x32xf32>
    %102 = vector.broadcast %101 : vector<1x32xf32> to vector<32x32xf32>
    %103 = arith.cmpf ole, %98, %102 : vector<32x32xf32>
    %cst_39 = arith.constant 3.200000e+01 : f32
    %104 = vector.broadcast %cst_39 : f32 to vector<32x32xf32>
    %105 = arith.select %103, %10, %104 : vector<32x32xi1>, vector<32x32xf32>
    %cst_40 = arith.constant dense<0x7F800000> : vector<32xf32>
    %106 = vector.multi_reduction <minimumf>, %105, %cst_40 [0] : vector<32x32xf32> to vector<32xf32>
    %107 = vector.shape_cast %106 : vector<32xf32> to vector<1x32xf32>
    %108 = vector.broadcast %107 : vector<1x32xf32> to vector<32x32xf32>
    %109 = arith.cmpf oeq, %10, %108 : vector<32x32xf32>
    %110 = arith.extui %109 : vector<32x32xi1> to vector<32x32xi32>
    %111 = arith.sitofp %110 : vector<32x32xi32> to vector<32x32xf32>
    %112 = arith.addf %99, %111 : vector<32x32xf32>
    %cst_41 = arith.constant 3.000000e+38 : f32
    %113 = vector.broadcast %cst_41 : f32 to vector<32x32xf32>
    %114 = arith.select %109, %113, %98 : vector<32x32xi1>, vector<32x32xf32>
    %cst_42 = arith.constant dense<0x7F800000> : vector<32xf32>
    %115 = vector.multi_reduction <minimumf>, %114, %cst_42 [0] : vector<32x32xf32> to vector<32xf32>
    %116 = vector.shape_cast %115 : vector<32xf32> to vector<1x32xf32>
    %117 = vector.broadcast %116 : vector<1x32xf32> to vector<32x32xf32>
    %118 = arith.cmpf ole, %114, %117 : vector<32x32xf32>
    %cst_43 = arith.constant 3.200000e+01 : f32
    %119 = vector.broadcast %cst_43 : f32 to vector<32x32xf32>
    %120 = arith.select %118, %10, %119 : vector<32x32xi1>, vector<32x32xf32>
    %cst_44 = arith.constant dense<0x7F800000> : vector<32xf32>
    %121 = vector.multi_reduction <minimumf>, %120, %cst_44 [0] : vector<32x32xf32> to vector<32xf32>
    %122 = vector.shape_cast %121 : vector<32xf32> to vector<1x32xf32>
    %123 = vector.broadcast %122 : vector<1x32xf32> to vector<32x32xf32>
    %124 = arith.cmpf oeq, %10, %123 : vector<32x32xf32>
    %125 = arith.extui %124 : vector<32x32xi1> to vector<32x32xi32>
    %126 = arith.sitofp %125 : vector<32x32xi32> to vector<32x32xf32>
    %127 = arith.addf %112, %126 : vector<32x32xf32>
    %cst_45 = arith.constant 3.000000e+38 : f32
    %128 = vector.broadcast %cst_45 : f32 to vector<32x32xf32>
    %129 = arith.select %124, %128, %114 : vector<32x32xi1>, vector<32x32xf32>
    %cst_46 = arith.constant dense<0x7F800000> : vector<32xf32>
    %130 = vector.multi_reduction <minimumf>, %129, %cst_46 [0] : vector<32x32xf32> to vector<32xf32>
    %131 = vector.shape_cast %130 : vector<32xf32> to vector<1x32xf32>
    %132 = vector.broadcast %131 : vector<1x32xf32> to vector<32x32xf32>
    %133 = arith.cmpf ole, %129, %132 : vector<32x32xf32>
    %cst_47 = arith.constant 3.200000e+01 : f32
    %134 = vector.broadcast %cst_47 : f32 to vector<32x32xf32>
    %135 = arith.select %133, %10, %134 : vector<32x32xi1>, vector<32x32xf32>
    %cst_48 = arith.constant dense<0x7F800000> : vector<32xf32>
    %136 = vector.multi_reduction <minimumf>, %135, %cst_48 [0] : vector<32x32xf32> to vector<32xf32>
    %137 = vector.shape_cast %136 : vector<32xf32> to vector<1x32xf32>
    %138 = vector.broadcast %137 : vector<1x32xf32> to vector<32x32xf32>
    %139 = arith.cmpf oeq, %10, %138 : vector<32x32xf32>
    %140 = arith.extui %139 : vector<32x32xi1> to vector<32x32xi32>
    %141 = arith.sitofp %140 : vector<32x32xi32> to vector<32x32xf32>
    %142 = arith.addf %127, %141 : vector<32x32xf32>
    %143 = arith.addf %142, %9 : vector<32x32xf32>
    %cst_49 = arith.constant dense<0.000000e+00> : vector<32xf32>
    %144 = vector.multi_reduction <add>, %143, %cst_49 [1] : vector<32x32xf32> to vector<32xf32>
    %145 = vector.shape_cast %144 : vector<32xf32> to vector<32x1xf32>
    %146 = math.rsqrt %145 : vector<32x1xf32>
    %147 = arith.truncf %86 : vector<32x256xf32> to vector<32x256xbf16>
    %cst_50 = arith.constant dense<0.000000e+00> : vector<32x128xf32>
    %148 = tpu.matmul %147, %87, %cst_50 {dimension_numbers = #tpu.dot_dimension_numbers<[1], [0], [0], [1], [0, 0, 1, 1], [], []>} : vector<32x256xbf16>, vector<256x128xbf16>, vector<32x128xf32> -> vector<32x128xf32>
    %149 = arith.truncf %143 : vector<32x32xf32> to vector<32x32xbf16>
    %150 = vector.broadcast %146 : vector<32x1xf32> to vector<32x128xf32>
    %151 = arith.mulf %150, %148 : vector<32x128xf32>
    %152 = arith.truncf %151 : vector<32x128xf32> to vector<32x128xbf16>
    %cst_51 = arith.constant dense<0.000000e+00> : vector<32x128xf32>
    %153 = tpu.matmul %149, %152, %cst_51 {dimension_numbers = #tpu.dot_dimension_numbers<[1], [0], [0], [1], [0, 0, 1, 1], [], []>} : vector<32x32xbf16>, vector<32x128xbf16>, vector<32x128xf32> -> vector<32x128xf32>
    %154 = vector.broadcast %146 : vector<32x1xf32> to vector<32x128xf32>
    %155 = arith.mulf %154, %153 : vector<32x128xf32>
    %156 = vector.broadcast %88 : vector<1x128xf32> to vector<32x128xf32>
    %157 = arith.addf %155, %156 : vector<32x128xf32>
    %cst_52 = arith.constant 0.000000e+00 : f32
    %158 = vector.broadcast %cst_52 : f32 to vector<32x128xf32>
    %159 = arith.cmpf oge, %157, %158 : vector<32x128xf32>
    %cst_53 = arith.constant 0.00999999977 : f32
    %160 = vector.broadcast %cst_53 : f32 to vector<32x128xf32>
    %161 = arith.mulf %160, %157 : vector<32x128xf32>
    %162 = arith.select %159, %157, %161 : vector<32x128xi1>, vector<32x128xf32>
    %c0_54 = arith.constant 0 : index
    %c0_55 = arith.constant 0 : index
    %163 = vector.load %arg3[%c0_54, %c0_55] : memref<4x32xf32, #tpu.memory_space<vmem>>, vector<4x32xf32>
    %cst_56 = arith.constant dense<0.000000e+00> : vector<4x128xf32>
    %164 = tpu.matmul %163, %162, %cst_56 {dimension_numbers = #tpu.dot_dimension_numbers<[1], [0], [0], [1], [0, 0, 1, 1], [], []>} : vector<4x32xf32>, vector<32x128xf32>, vector<4x128xf32> -> vector<4x128xf32>
    %c0_57 = arith.constant 0 : index
    %c0_58 = arith.constant 0 : index
    %165 = vector.load %arg8[%c0_57, %c0_58] : memref<128x64xf32, #tpu.memory_space<vmem>>, vector<128x64xf32>
    %cst_59 = arith.constant dense<0.000000e+00> : vector<4x64xf32>
    %166 = tpu.matmul %164, %165, %cst_59 {dimension_numbers = #tpu.dot_dimension_numbers<[1], [0], [0], [1], [0, 0, 1, 1], [], []>} : vector<4x128xf32>, vector<128x64xf32>, vector<4x64xf32> -> vector<4x64xf32>
    %c0_60 = arith.constant 0 : index
    %c0_61 = arith.constant 0 : index
    %167 = vector.load %arg9[%c0_60, %c0_61] : memref<1x64xf32, #tpu.memory_space<vmem>>, vector<1x64xf32>
    %168 = vector.broadcast %167 : vector<1x64xf32> to vector<4x64xf32>
    %169 = arith.addf %166, %168 : vector<4x64xf32>
    %cst_62 = arith.constant 0.000000e+00 : f32
    %170 = vector.broadcast %cst_62 : f32 to vector<4x64xf32>
    %171 = arith.maximumf %169, %170 : vector<4x64xf32>
    %c0_63 = arith.constant 0 : index
    %c0_64 = arith.constant 0 : index
    %172 = vector.load %arg10[%c0_63, %c0_64] : memref<64x3xf32, #tpu.memory_space<vmem>>, vector<64x3xf32>
    %cst_65 = arith.constant dense<0.000000e+00> : vector<4x3xf32>
    %173 = tpu.matmul %171, %172, %cst_65 {dimension_numbers = #tpu.dot_dimension_numbers<[1], [0], [0], [1], [0, 0, 1, 1], [], []>} : vector<4x64xf32>, vector<64x3xf32>, vector<4x3xf32> -> vector<4x3xf32>
    %c0_66 = arith.constant 0 : index
    %c0_67 = arith.constant 0 : index
    %174 = vector.load %arg11[%c0_66, %c0_67] : memref<1x3xf32, #tpu.memory_space<vmem>>, vector<1x3xf32>
    %175 = vector.broadcast %174 : vector<1x3xf32> to vector<4x3xf32>
    %176 = arith.addf %173, %175 : vector<4x3xf32>
    %cst_68 = arith.constant dense<0xFF800000> : vector<4xf32>
    %177 = vector.multi_reduction <maximumf>, %176, %cst_68 [1] : vector<4x3xf32> to vector<4xf32>
    %178 = vector.shape_cast %177 : vector<4xf32> to vector<4x1xf32>
    %179 = vector.broadcast %178 : vector<4x1xf32> to vector<4x3xf32>
    %180 = arith.subf %176, %179 : vector<4x3xf32>
    %181 = math.exp %180 : vector<4x3xf32>
    %cst_69 = arith.constant dense<0.000000e+00> : vector<4xf32>
    %182 = vector.multi_reduction <add>, %181, %cst_69 [1] : vector<4x3xf32> to vector<4xf32>
    %183 = vector.shape_cast %182 : vector<4xf32> to vector<4x1xf32>
    %184 = vector.broadcast %183 : vector<4x1xf32> to vector<4x3xf32>
    %185 = arith.divf %181, %184 : vector<4x3xf32>
    %c0_70 = arith.constant 0 : index
    %c0_71 = arith.constant 0 : index
    %c0_72 = arith.constant 0 : index
    %186 = vector.load %arg12[%c0_70, %c0_71, %c0_72] : memref<1x4x3xf32, #tpu.memory_space<vmem>>, vector<1x4x3xf32>
    %187 = vector.shape_cast %186 : vector<1x4x3xf32> to vector<4x3xf32>
    %188 = vector.shape_cast %185 : vector<4x3xf32> to vector<1x4x3xf32>
    tpu.vector_store %arg12[%c0_70, %c0_71, %c0_72], %188 {strides = array<i32>} : memref<1x4x3xf32, #tpu.memory_space<vmem>>, vector<1x4x3xf32>,
    return
  }
  func.func @transform_0(%arg0: i32) -> (i32, i32, i32) {
    %c0_i32 = arith.constant 0 : i32
    %c0_i32_0 = arith.constant 0 : i32
    %c0_i32_1 = arith.constant 0 : i32
    return %arg0, %c0_i32, %c0_i32_0 : i32, i32, i32
  }
  func.func @transform_1(%arg0: i32) -> (i32, i32) {
    %c0_i32 = arith.constant 0 : i32
    %c0_i32_0 = arith.constant 0 : i32
    %c0_i32_1 = arith.constant 0 : i32
    return %c0_i32, %c0_i32_0 : i32, i32
  }
  func.func @transform_2(%arg0: i32) -> (i32, i32) {
    %c0_i32 = arith.constant 0 : i32
    %c0_i32_0 = arith.constant 0 : i32
    %c0_i32_1 = arith.constant 0 : i32
    return %c0_i32, %c0_i32_0 : i32, i32
  }
  func.func @transform_3(%arg0: i32) -> (i32, i32) {
    %c0_i32 = arith.constant 0 : i32
    %c0_i32_0 = arith.constant 0 : i32
    %c0_i32_1 = arith.constant 0 : i32
    return %c0_i32, %c0_i32_0 : i32, i32
  }
  func.func @transform_4(%arg0: i32) -> (i32, i32) {
    %c0_i32 = arith.constant 0 : i32
    %c0_i32_0 = arith.constant 0 : i32
    %c0_i32_1 = arith.constant 0 : i32
    return %c0_i32, %c0_i32_0 : i32, i32
  }
  func.func @transform_5(%arg0: i32) -> (i32, i32) {
    %c0_i32 = arith.constant 0 : i32
    %c0_i32_0 = arith.constant 0 : i32
    %c0_i32_1 = arith.constant 0 : i32
    return %c0_i32, %c0_i32_0 : i32, i32
  }
  func.func @transform_6(%arg0: i32) -> (i32, i32) {
    %c0_i32 = arith.constant 0 : i32
    %c0_i32_0 = arith.constant 0 : i32
    %c0_i32_1 = arith.constant 0 : i32
    return %c0_i32, %c0_i32_0 : i32, i32
  }
  func.func @transform_7(%arg0: i32) -> (i32, i32) {
    %c0_i32 = arith.constant 0 : i32
    %c0_i32_0 = arith.constant 0 : i32
    %c0_i32_1 = arith.constant 0 : i32
    return %c0_i32, %c0_i32_0 : i32, i32
  }
  func.func @transform_8(%arg0: i32) -> (i32, i32) {
    %c0_i32 = arith.constant 0 : i32
    %c0_i32_0 = arith.constant 0 : i32
    %c0_i32_1 = arith.constant 0 : i32
    return %c0_i32, %c0_i32_0 : i32, i32
  }
  func.func @transform_9(%arg0: i32) -> (i32, i32) {
    %c0_i32 = arith.constant 0 : i32
    %c0_i32_0 = arith.constant 0 : i32
    %c0_i32_1 = arith.constant 0 : i32
    return %c0_i32, %c0_i32_0 : i32, i32
  }
  func.func @transform_10(%arg0: i32) -> (i32, i32) {
    %c0_i32 = arith.constant 0 : i32
    %c0_i32_0 = arith.constant 0 : i32
    %c0_i32_1 = arith.constant 0 : i32
    return %c0_i32, %c0_i32_0 : i32, i32
  }
  func.func @transform_11(%arg0: i32) -> (i32, i32, i32) {
    %c0_i32 = arith.constant 0 : i32
    %c0_i32_0 = arith.constant 0 : i32
    %c0_i32_1 = arith.constant 0 : i32
    return %arg0, %c0_i32, %c0_i32_0 : i32, i32, i32
  }
}

</mosaic_0001>

<bundles_post_ra>
// kernel: gnn_forward.1
= control target key start
LH: loop header
LB: loop body
LE: loop exit
PB: predicated region body
PF: predicated region fallthrough
CT: control target
= control target key end

     0   :  { %s3366_s0 = inlined_call_operand.hbm [shape: f32[8,8,128], index: 0, kind: input, shape index: {}]   ;;  %s3367_s1 = inlined_call_operand.vmem [shape: f32[32,32], index: 1, kind: input, shape index: {}]   ;;  %s3368_s2 = inlined_call_operand.vmem [shape: f32[4,32], index: 2, kind: input, shape index: {}]   ;;  %s3369_s3 = inlined_call_operand.vmem [shape: bf16[128,256], index: 3, kind: input, shape index: {}]   ;;  %s3370_s4 = inlined_call_operand.vmem [shape: f32[1,256], index: 4, kind: input, shape index: {}]   ;;  %s3371_s5 = inlined_call_operand.vmem [shape: bf16[256,128], index: 5, kind: input, shape index: {}]   ;;  %s3372_s6 = inlined_call_operand.hbm [shape: f32[1,128], index: 6, kind: input, shape index: {}]   ;;  %s3373_s7 = inlined_call_operand.vmem [shape: f32[128,64], index: 7, kind: input, shape index: {}]   ;;  %s3374_s8 = inlined_call_operand.hbm [shape: f32[1,64], index: 8, kind: input, shape index: {}]   ;;  %s3375_s9 = inlined_call_operand.vmem [shape: f32[64,3], index: 9, kind: input, shape index: {}]   ;;  %s3376_s10 = inlined_call_operand.hbm [shape: f32[1,3], index: 10, kind: input, shape index: {}]   ;;  %s3377_s11 = inlined_call_operand.vmem [shape: f32[2,4,3], index: 11, kind: output, shape index: {}]  }
   0x1   :  { %3381 = sst [smem:[#allocation12_spill]] %s3377_s11 }
   0x2   :  { %16 = vsyncpa [#allocation3], 0 }
   0x3   :  { %18 = vsyncpa [#allocation3 + $0x1], 0 }
   0x4   :  { %19 = vsyncpa [#allocation5], 0 }
   0x5   :  { %20 = vsyncpa [#allocation8], 0  ;;  %s2641_s17 = smov 0   ;;  %s2643_s18 = smov 0  }
   0x6   :  { %s2645_s19 = smov 0   ;;  %s2647_s20 = smov 0  }
   0x7 LB: > { %s2660_s21 = sadd.s32 4294967295, %s2569_s20   ;;  %p46_p0 = scmp.ne.s32.totalorder %s2561_s18, %s2557_s17  ;;  %s2569_s20 = sphi %s2647_s20, %s3398_s20   ;;  %s2565_s19 = sphi %s2645_s19, %s3397_s19   ;;  %s2561_s18 = sphi %s2643_s18, %s3396_s18   ;;  %s2557_s17 = sphi %s2641_s17, %s3395_s17  }
   0x8   : > { %p3378_p1 = scmp.eq.s32.totalorder %s2660_s21, 0  ;;  %p1975_p2 = scmp.ge.s32.totalorder %s2569_s20, 1 }
   0x9   : > { %p293_p3 = scmp.lt.s32.totalorder %s2569_s20, 3  ;;  %s2571_s24 = smov [#allocation4]  }
   0xa   : > { %p2668_p4 = por %p3378_p1, %p46_p0  ;;  %s321_s25 = sshll.u32 %s2571_s24, 4  ;;  %s322_s25 = int_to_ptr.vmem [resolvable:$true] %s321_s25 }
   0xb   : > { %p2672_p5 = pnand %p1975_p2, %p293_p3  ;;  %s2572_s26 = smov [#allocation6]  }
   0xc   : > { %s3382_s22 = scalar_select %p2668_p4, 1, 0 }
   0xd   : > { %s3383_s23 = scalar_select %p2672_p5, 1, 0 }
   0xe   : > { %p2291_p6 = pneg %p2672_p5  ;;  %s335_s27 = sshll.u32 %s2572_s26, 4  ;;  %s2684_s27 = int_to_ptr.vmem [resolvable:$true] %s335_s27 }
   0xf   : > { %s2573_s29 = smov [#allocation7]   ;;  %s2413_s14 = scalar_lea.hbm %s3372_s6, 16 }
  0x10   : > { %p2680_p7 = pnand %p2291_p6, %p3378_p1  ;;  %s349_s30 = sshll.u32 %s2573_s29, 4  ;;  %s2686_s30 = int_to_ptr.vmem [resolvable:$true] %s349_s30 }
  0x11   : > { %p2414_p8 = scmp.ne.s32.totalorder %s3372_s6, %s2413_s14  ;;  %p2420_p12 = scmp.lt.u32.totalorder %s2413_s14, %s3372_s6 }
  0x12   : > { %p2696_p9 = pneg %p2680_p7 }
  0x14   : > { %p2416_p10 = pnand %p2696_p9, %p2414_p8 }
  0x16   : > { %p2417_p11 = pneg %p2416_p10 }
  0x18   : > { %p2422_p13 = pnand %p2420_p12, %p2417_p11 }
  0x1a   : > { %2425 = shalt.err (!%p2422_p13)
}
  0x1b   : > { %s2426_s29 = scalar_lea.vmem %s322_s25, 16  ;;  %s2433_s12 = scalar_lea.vmem %s322_s25, 32 }
  0x1c   : > { %p2427_p0 = scmp.ne.s32.totalorder %s322_s25, %s2426_s29  ;;  %p2434_p6 = scmp.lt.s32.totalorder %s322_s25, %s322_s25 }
  0x1d   : > { %p2435_p1 = scmp.lt.s32.totalorder %s2433_s12, %s2426_s29 }
  0x1e   : > { %p2429_p2 = pnand %p2427_p0, %p2696_p9 }
  0x1f   : > { %p2436_p4 = por %p2435_p1, %p2434_p6 }
  0x20   : > { %p2430_p3 = pneg %p2429_p2 }
  0x22   : > { %p2437_p5 = pnand %p2436_p4, %p2430_p3 }
  0x24   : > { %2440 = shalt.err (!%p2437_p5)
}
  0x25   : > { %2294 = dma.hbm_to_vmem [thread:$0]  (!%p2680_p7), %s3372_s6, 16, %s322_s25, [#allocation5]  }
  0x26   : > { %s2441_s24 = scalar_lea.hbm %s3374_s8, 16 }
  0x27   : > { %p2442_p8 = scmp.ne.s32.totalorder %s3374_s8, %s2441_s24  ;;  %p2448_p4 = scmp.lt.u32.totalorder %s2441_s24, %s3374_s8 }
  0x29   : > { %p2444_p10 = pnand %p2442_p8, %p2696_p9 }
  0x2b   : > { %p2445_p1 = pneg %p2444_p10 }
  0x2d   : > { %p2450_p5 = pnand %p2448_p4, %p2445_p1 }
  0x2f   : > { %2453 = shalt.err (!%p2450_p5)
}
  0x30   : > { %s2454_s25 = scalar_lea.vmem %s2684_s27, 16  ;;  %s2461_s11 = scalar_lea.vmem %s2684_s27, 32 }
  0x31   : > { %p2455_p11 = scmp.ne.s32.totalorder %s2684_s27, %s2454_s25  ;;  %p2462_p0 = scmp.lt.s32.totalorder %s2684_s27, %s2684_s27 }
  0x32   : > { %p2463_p2 = scmp.lt.s32.totalorder %s2461_s11, %s2454_s25 }
  0x33   : > { %p2457_p12 = pnand %p2455_p11, %p2696_p9 }
  0x34   : > { %p2464_p3 = por %p2463_p2, %p2462_p0 }
  0x35   : > { %p2458_p13 = pneg %p2457_p12 }
  0x37   : > { %p2465_p6 = pnand %p2464_p3, %p2458_p13 }
  0x39   : > { %2468 = shalt.err (!%p2465_p6)
}
  0x3a   : > { %2297 = dma.hbm_to_vmem [thread:$0]  (!%p2680_p7), %s3374_s8, 16, %s2684_s27, [#allocation5]  }
  0x3b   : > { %s2469_s24 = scalar_lea.hbm %s3376_s10, 16 }
  0x3c   : > { %p2470_p8 = scmp.ne.s32.totalorder %s3376_s10, %s2469_s24  ;;  %p2476_p4 = scmp.lt.u32.totalorder %s2469_s24, %s3376_s10 }
  0x3e   : > { %p2472_p10 = pnand %p2470_p8, %p2696_p9 }
  0x40   : > { %p2473_p1 = pneg %p2472_p10 }
  0x42   : > { %p2478_p5 = pnand %p2476_p4, %p2473_p1 }
  0x44   : > { %2481 = shalt.err (!%p2478_p5)
}
  0x45   : > { %s2482_s27 = scalar_lea.vmem %s2686_s30, 16  ;;  %s2489_s11 = scalar_lea.vmem %s2686_s30, 32 }
  0x46   : > { %p2483_p11 = scmp.ne.s32.totalorder %s2686_s30, %s2482_s27  ;;  %p2490_p0 = scmp.lt.s32.totalorder %s2686_s30, %s2686_s30 }
  0x47   : > { %p2491_p2 = scmp.lt.s32.totalorder %s2489_s11, %s2482_s27 }
  0x48   : > { %p2485_p12 = pnand %p2483_p11, %p2696_p9 }
  0x49   : > { %p2492_p3 = por %p2491_p2, %p2490_p0 }
  0x4a   : > { %p2486_p13 = pneg %p2485_p12 }
  0x4c   : > { %p2493_p6 = pnand %p2492_p3, %p2486_p13 }
  0x4e   : > { %2496 = shalt.err (!%p2493_p6)
}
  0x4f   : > { %2300 = dma.hbm_to_vmem [thread:$0]  (!%p2680_p7), %s3376_s10, 16, %s2686_s30, [#allocation8]  }
  0x50   : > { %s2761_s17 = sadd.s32 1, %s2569_s20   ;;  %s33_s28 = sadd.s32 1, %s2565_s19 }
  0x51   : > { %s30_s14 = ssub.s32 %s2569_s20, %s2761_s17  ;;  %p40_p8 = scmp.ne.s32.totalorder %s2565_s19, %s2561_s18 }
  0x52   : > { %p31_p9 = scmp.eq.s32.totalorder %s30_s14, 0  ;;  %p41_p10 = scmp.eq.s32.totalorder %s2569_s20, 0 }
  0x53   : > { %p2308_p1 = scmp.lt.s32.totalorder %s2569_s20, 2  ;;  %s360_s24 = sand.u32 1, %s2565_s19  }
  0x54   : > { %s2771_s16 = scalar_select %p31_p9, %s2565_s19, %s33_s28  }
  0x55   : > { %p42_p4 = por %p41_p10, %p40_p8  ;;  %s1980_s26 = sshll.u32 %s360_s24, 5 }
  0x56   : > { %s2060_s29 = sshll.u32 %s2569_s20, 9  ;;  %s364_s30 = scalar_lea.vmem [#allocation2], %s1980_s26 }
  0x57   : > { %s2778_s27 = scalar_lea.hbm %s3366_s0, %s2060_s29  ;;  %s371_s11 = sshll.u32 %s364_s30, 4  ;;  %s2780_s11 = int_to_ptr.vmem [resolvable:$true] %s371_s11 }
  0x58   : > { %p2782_p7 = pnand %p2308_p1, %p42_p4  ;;  %s2786_s20 = scalar_lea.sflag [#allocation3], %s360_s24 }
  0x59   : > { %s2497_s15 = scalar_lea.hbm %s2778_s27, 512  ;;  %s2502_s26 = scalar_lea.hbm %s3366_s0, 1024 }
  0x5a   : > { %p2498_p5 = scmp.ne.s32.totalorder %s2778_s27, %s2497_s15  ;;  %p2499_p11 = pneg %p2782_p7 }
  0x5b   : > { %p2503_p0 = scmp.lt.u32.totalorder %s2778_s27, %s3366_s0  ;;  %p2504_p2 = scmp.lt.u32.totalorder %s2502_s26, %s2497_s15 }
  0x5c   : > { %p2500_p12 = pnand %p2499_p11, %p2498_p5  ;;  %p2506_p6 = scmp.lt.u32.totalorder %s2497_s15, %s2778_s27 }
  0x5d   : > { %p2505_p3 = por %p2504_p2, %p2503_p0 }
  0x5e   : > { %p2501_p13 = pneg %p2500_p12 }
  0x5f   : > { %p2507_p9 = por %p2506_p6, %p2505_p3 }
  0x61   : > { %p2508_p8 = pnand %p2507_p9, %p2501_p13 }
  0x63   : > { %2511 = shalt.err (!%p2508_p8)
}
  0x64   : > { %s2512_s24 = scalar_lea.vmem %s2780_s11, 512  ;;  %s2574_s25 = smov [#allocation2]  }
  0x65   : > { %p2513_p10 = scmp.ne.s32.totalorder %s2780_s11, %s2512_s24  ;;  %s2517_s30 = sshll.u32 %s2574_s25, 4  ;;  %s2518_s30 = int_to_ptr.vmem [resolvable:$false] %s2517_s30 }
  0x66   : > { %s2519_s14 = scalar_lea.vmem %s2518_s30, 1024  ;;  %p2520_p5 = scmp.lt.s32.totalorder %s2780_s11, %s2518_s30 }
  0x67   : > { %p2515_p1 = pnand %p2513_p10, %p2499_p11  ;;  %p2521_p12 = scmp.lt.s32.totalorder %s2519_s14, %s2512_s24 }
  0x69   : > { %p2516_p4 = pneg %p2515_p1  ;;  %p2522_p0 = por %p2521_p12, %p2520_p5 }
  0x6b   : > { %p2523_p2 = pnand %p2522_p0, %p2516_p4 }
  0x6d   : > { %2526 = shalt.err (!%p2523_p2)
}
  0x6e   : > { %s2575_s15 = smov 128   ;;  %s2576_s28 = smov 8  }
  0x6f   : > { %2304 = dma.hbm_to_vmem [thread:$0]  (!%p2782_p7), %s2778_s27, 512, %s2780_s11, %s2786_s20, %s2575_s15, %s2575_s15, %s2576_s28  }
  0x70   : > { %p3387_p11 = scmp.ne.s32.totalorder %s3383_s23, 0 }
  0x71   : > { %s385_s26 = sand.u32 (!%p3387_p11), 1, %s2561_s18   ;;  %p3388_p13 = scmp.ne.s32.totalorder (!%p3387_p11), %s3382_s22, 0 }
  0x72   : > { %383 = sbr.rel (%p3387_p11) target bundleno = 2600 (0xa28), region = 64  ;;  %s1984_s29 = sshll.u32 (!%p3387_p11), %s385_s26, 5 }
  0x73   : > { %s386_s12 = scalar_lea.sflag (!%p3387_p11), [#allocation3], %s385_s26  ;;  %s389_s24 = scalar_lea.vmem (!%p3387_p11), [#allocation2], %s1984_s29 }
  0x79   : > { %2544 = dma.done.wait (%p3388_p13), %s386_s12, 512  }
  0x7a   : > { %2546 = vsyncadd (%p3388_p13), %s386_s12, 4294966784  ;;  %p3389_p3 = scmp.eq.s32.totalorder %s2660_s21, 0 }
  0x7c   : > { %2548 = dma.done.wait (%p3389_p3), [#allocation5], 32   ;;  %p3390_p6 = pmov %p3389_p3 }
  0x7d   : > { %p3391_p7 = pmov %p3389_p3 }
  0x7e   : > { %2550 = vsyncadd (%p3390_p6), [#allocation5], 4294967264 }
  0x7f   : > { %2552 = dma.done.wait (%p3391_p7), [#allocation8], 16   ;;  %p3392_p9 = pmov %p3389_p3 }
  0x80   : > { %v445_v0 = vld [vmem:[%s389_s24] sm:$0xff]  ;;  %v446_v1 = vld [vmem:[%s389_s24 + $0x8] sm:$0xff]  ;;  %v447_v2 = vld [vmem:[%s389_s24 + $0x10] sm:$0xff]  ;;  %v2577_v26 = vmov 0   ;;  %vm606_vm2 = vcmask 261120   ;;  %v457_v57 = vlaneseq  ;;  %p440_p8 = scmp.lt.s32.totalorder %s2660_s21, 1 }
  0x81   : > { %2554 = vsyncadd (%p3392_p9), [#allocation8], 4294967280  ;;  %v2219_v3 = vpack.c.bf16 %v446_v1, %v445_v0  ;;  %v448_v4 = vld [vmem:[%s389_s24 + $0x18] sm:$0xff]  ;;  %2140 = vmatprep.mubr.f32.mxu0 %v445_v0  ;;  %v497_v5 = vmul.f32 %v445_v0, %v445_v0  ;;  %v499_v6 = vmul.f32 %v447_v2, %v447_v2  ;;  %v498_v8 = vmul.f32 %v446_v1, %v446_v1  ;;  %v2353_v10 = vld [vmem:[%s3369_s3 + $0x4] ss:$8 sps:$4 sm:$0xff]   ;;  %s3393_s30 = sld [smem:[#allocation12_spill]] }
  0x82   : > { %v2223_v7 = vpack.c.bf16 %v448_v4, %v447_v2  ;;  %v500_v9 = vmul.f32 %v448_v4, %v448_v4  ;;  %v2355_v11 = vld [vmem:[%s3369_s3] ss:$8 sps:$4 sm:$0xff]   ;;  %867 = vmatprep.subr.bf16.mxu1 %v2353_v10  ;;  %v2356_v12 = vld [vmem:[%s3369_s3 + $0x14] ss:$8 sps:$4 sm:$0xff]   ;;  %v2358_v13 = vld [vmem:[%s3369_s3 + $0x10] ss:$8 sps:$4 sm:$0xff]   ;;  %899 = vmatprep.mubr.bf16.mxu1 %v2577_v26 }
  0x83   : > { %2220 = vmatprep.subr.bf16.mxu0 %v2219_v3  ;;  %501 = vadd.xlane.f32.xlu0 %v497_v5  ;;  %v2359_v14 = vld [vmem:[%s3369_s3 + $0x24] ss:$8 sps:$4 sm:$0xff]   ;;  %v2361_v15 = vld [vmem:[%s3369_s3 + $0x20] ss:$8 sps:$4 sm:$0xff]   ;;  %v2362_v16 = vld [vmem:[%s3369_s3 + $0x34] ss:$8 sps:$4 sm:$0xff]  }
  0x84   : > { %2222 = vmatpush3.bf16.xpose.msra.mxu0 %v2219_v3  ;;  %505 = vadd.xlane.f32.xlu1 %v499_v6  ;;  %v2364_v17 = vld [vmem:[%s3369_s3 + $0x30] ss:$8 sps:$4 sm:$0xff]   ;;  %v2365_v18 = vld [vmem:[%s3369_s3 + $0x44] ss:$8 sps:$4 sm:$0xff]   ;;  %v2367_v19 = vld [vmem:[%s3369_s3 + $0x40] ss:$8 sps:$4 sm:$0xff]  }
  0x85   : > { %2224 = vmatprep.subr.bf16.mxu0 %v2223_v7  ;;  %868 = vmatpush1.bf16.msra.mxu1 %v2355_v11  ;;  %v2368_v20 = vld [vmem:[%s3369_s3 + $0x54] ss:$8 sps:$4 sm:$0xff]   ;;  %v2370_v21 = vld [vmem:[%s3369_s3 + $0x50] ss:$8 sps:$4 sm:$0xff]   ;;  %v2371_v22 = vld [vmem:[%s3369_s3 + $0x64] ss:$8 sps:$4 sm:$0xff]  }
  0x86   : > { %869 = vmatprep.subr.bf16.mxu1 %v2356_v12  ;;  %v2373_v23 = vld [vmem:[%s3369_s3 + $0x60] ss:$8 sps:$4 sm:$0xff]   ;;  %v2374_v24 = vld [vmem:[%s3369_s3 + $0x74] ss:$8 sps:$4 sm:$0xff]   ;;  %v2376_v25 = vld [vmem:[%s3369_s3 + $0x70] ss:$8 sps:$4 sm:$0xff]  }
  0x87   : > { %503 = vadd.xlane.f32.xlu0 %v498_v8  ;;  %v2883_v29 = vld [vmem:[%s3367_s1 + $0x8] sm:$0xff]  ;;  %v2888_v31 = vld [vmem:[%s3367_s1] sm:$0xff]  ;;  %v2895_v37 = vld [vmem:[%s3367_s1 + $0x18] sm:$0xff]  ;;  %v2917_v60 = vshrl.u32 %v457_v57, 7  ;;  %s3400_s21 = smov (!%p440_p8, %s2660_s21), 1 }
  0x88   : > { %507 = vadd.xlane.f32.xlu1 %v500_v9  ;;  %vm454_vm0 = vcmp.gt.f32.partialorder %v2883_v29, 0.5  ;;  %vm453_vm1 = vcmp.gt.f32.partialorder %v2888_v31, 0.5  ;;  %v2900_v40 = vld [vmem:[%s3367_s1 + $0x10] sm:$0xff]  ;;  %vm456_vm3 = vcmp.gt.f32.partialorder %v2895_v37, 0.5  ;;  %s1988_s13 = sshll.u32 %s3400_s21, 2 }
  0x89   : > { %870 = vmatpush1.bf16.msra.mxu1 %v2358_v13  ;;  %vm455_vm4 = vcmp.gt.f32.partialorder %v2900_v40, 0.5  ;;  %v2920_v63 = vadd.s32 8, %v2917_v60  ;;  %v2923_v0 = vadd.s32 16, %v2917_v60  ;;  %s443_s14 = scalar_lea.vmem %s3393_s30, %s1988_s13 }
  0x8a   : > { %871 = vmatprep.subr.bf16.mxu1 %v2359_v14 }
  0x8b   : > { %v2932_v5 = vcvt.s32.f32 %v2920_v63  ;;  %v2935_v6 = vcvt.s32.f32 %v2923_v0 }
  0x8c   : > { %2226 = vmatpush3.bf16.xpose.msra.mxu0 %v2223_v7 }
  0x8d   : > { %872 = vmatpush1.bf16.msra.mxu1 %v2361_v15 }
  0x8e   : > { %873 = vmatprep.subr.bf16.mxu1 %v2362_v16 }
  0x91   : > { %874 = vmatpush1.bf16.msra.mxu1 %v2364_v17 }
  0x92   : > { %875 = vmatprep.subr.bf16.mxu1 %v2365_v18 }
  0x93   : > { %2141 = vmatmul.mubr.f32.vlgmr.msra.gmra.mrb[0].mxu0 %v446_v1  ;;  %v2926_v1 = vadd.s32 24, %v2917_v60 }
  0x94   : > { %2143 = vmatprep.mubr.f32.mxu0 %v447_v2 }
  0x95   : > { %876 = vmatpush1.bf16.msra.mxu1 %v2367_v19 }
  0x96   : > { %877 = vmatprep.subr.bf16.mxu1 %v2368_v20 }
  0x97   : > { %2144 = vmatmul.mubr.f32.gmra.mrb[2].mxu0 %v448_v4  ;;  %v2929_v4 = vcvt.s32.f32 %v2917_v60 }
  0x98   : > { %972 = vmatprep.mubr.bf16.mxu0 %v2577_v26 }
  0x99   : > { %878 = vmatpush1.bf16.msra.mxu1 %v2370_v21 }
  0x9a   : > { %879 = vmatprep.subr.bf16.mxu1 %v2371_v22 }
  0x9d   : > { %880 = vmatpush1.bf16.msra.mxu1 %v2373_v23 }
  0x9e   : > { %881 = vmatprep.subr.bf16.mxu1 %v2374_v24 }
  0xa1   : > { %882 = vmatpush1.bf16.msra.mxu1 %v2376_v25 }
  0xa4   : > { %900 = vmatmul.mubr.bf16.vlgmr.msra.gmra.mrb[0].mxu1 %v2219_v3 }
  0xa5   : > { %909 = vmatprep.mubr.bf16.mxu1 %v2577_v26 }
  0xac   : > { %910 = vmatmul.mubr.bf16.gmra.mrb[4].mxu1 %v2223_v7  ;;  %v2938_v7 = vcvt.s32.f32 %v2926_v1 }
 0x110   : > { %v502_v27 = vpop.xlane.xlu0 %501 }
 0x111   : > { %v506_v28 = vpop.xlane.xlu1 %505 }
 0x114   : > { %v504_v32 = vpop.xlane.xlu0 %503 }
 0x115   : > { %v508_v41 = vpop.xlane.xlu1 %507 }
 0x166   : > { %v2142_v30 = vpop.f32.mrb[0].mxu0 }
 0x167   : > { %v595_v33 = vmul.f32 2.0, %v2142_v30  ;;  %v575_v34 = vpop.f32.mrb[1].mxu0 }
 0x168   : > { %v594_v35 = vmul.f32 2.0, %v575_v34 }
 0x169   : > { %v599_v36 = vsub.f32 %v504_v32, %v595_v33 }
 0x16a   : > { %v598_v38 = vsub.f32 %v502_v27, %v594_v35  ;;  %v2145_v39 = vpop.f32.mrb[2].mxu0 }
 0x16b   : > { %v603_v42 = vsel %vm454_vm0, 3e+38, %v599_v36  ;;  %v597_v43 = vmul.f32 2.0, %v2145_v39  ;;  %v585_v44 = vpop.f32.mrb[3].mxu0 }
 0x16c   : > { %v602_v45 = vsel %vm453_vm1, 3e+38, %v598_v38  ;;  %v608_v46 = vsel %vm606_vm2, %v603_v42, inf  ;;  %v596_v47 = vmul.f32 2.0, %v585_v44 }
 0x16d   : > { %v607_v48 = vsel %vm606_vm2, %v602_v45, inf  ;;  %v601_v49 = vsub.f32 %v508_v41, %v597_v43 }
 0x16e   : > { %v611_v50 = vmin.f32 %v607_v48, %v608_v46  ;;  %v600_v51 = vsub.f32 %v506_v28, %v596_v47 }
 0x16f   : > { %v605_v52 = vsel %vm456_vm3, 3e+38, %v601_v49 }
 0x170   : > { %v604_v53 = vsel %vm455_vm4, 3e+38, %v600_v51  ;;  %v610_v54 = vsel %vm606_vm2, %v605_v52, inf }
 0x171   : > { %v609_v55 = vsel %vm606_vm2, %v604_v53, inf }
 0x172   : > { %v612_v56 = vmin.f32 %v609_v55, %v610_v54 }
 0x174   : > { %v613_v58 = vmin.f32 %v611_v50, %v612_v56 }
 0x176   : > { %v614_v59 = vrot.slane %v613_v58, 4 }
 0x178   : > { %v615_v61 = vmin.f32 %v613_v58, %v614_v59 }
 0x17a   : > { %v616_v62 = vrot.slane %v615_v61, 2 }
 0x17c   : > { %v617_v2 = vmin.f32 %v615_v61, %v616_v62 }
 0x17e   : > { %v618_v3 = vrot.slane %v617_v2, 1 }
 0x180   : > { %v619_v8 = vmin.f32 %v617_v2, %v618_v3 }
 0x182   : > { %vm620_vm5 = vcmp.le.f32.partialorder %v602_v45, %v619_v8  ;;  %vm621_vm6 = vcmp.le.f32.partialorder %v603_v42, %v619_v8  ;;  %vm622_vm7 = vcmp.le.f32.partialorder %v604_v53, %v619_v8  ;;  %vm623_vm8 = vcmp.le.f32.partialorder %v605_v52, %v619_v8 }
 0x183   : > { %v624_v9 = vsel %vm620_vm5, %v2929_v4, 32.0  ;;  %v625_v10 = vsel %vm621_vm6, %v2932_v5, 32.0  ;;  %v626_v11 = vsel %vm622_vm7, %v2935_v6, 32.0  ;;  %v627_v12 = vsel %vm623_vm8, %v2938_v7, 32.0 }
 0x184   : > { %v628_v13 = vsel %vm606_vm2, %v624_v9, inf  ;;  %v629_v14 = vsel %vm606_vm2, %v625_v10, inf  ;;  %v630_v15 = vsel %vm606_vm2, %v626_v11, inf  ;;  %v631_v16 = vsel %vm606_vm2, %v627_v12, inf }
 0x185   : > { %v632_v17 = vmin.f32 %v628_v13, %v629_v14  ;;  %v633_v18 = vmin.f32 %v630_v15, %v631_v16  ;;  %v2578_v10 = vmov 0.0  }
 0x187   : > { %v634_v19 = vmin.f32 %v632_v17, %v633_v18 }
 0x189   : > { %v635_v20 = vrot.slane %v634_v19, 4 }
 0x18b   : > { %v636_v21 = vmin.f32 %v634_v19, %v635_v20 }
 0x18d   : > { %v637_v22 = vrot.slane %v636_v21, 2 }
 0x18f   : > { %v638_v23 = vmin.f32 %v636_v21, %v637_v22 }
 0x191   : > { %v639_v24 = vrot.slane %v638_v23, 1 }
 0x193   : > { %v2948_v25 = vmin.f32 %v638_v23, %v639_v24 }
 0x195   : > { %vm641_vm9 = vcmp.eq.f32.partialorder %v2929_v4, %v2948_v25  ;;  %vm642_vm10 = vcmp.eq.f32.partialorder %v2932_v5, %v2948_v25  ;;  %vm643_vm11 = vcmp.eq.f32.partialorder %v2935_v6, %v2948_v25  ;;  %vm644_vm12 = vcmp.eq.f32.partialorder %v2938_v7, %v2948_v25 }
 0x196   : > { %v657_v27 = vsel %vm641_vm9, 3e+38, %v602_v45  ;;  %v658_v28 = vsel %vm642_vm10, 3e+38, %v603_v42  ;;  %v659_v30 = vsel %vm643_vm11, 3e+38, %v604_v53 }
 0x197   : > { %v660_v32 = vsel %vm644_vm12, 3e+38, %v605_v52  ;;  %v661_v33 = vsel %vm606_vm2, %v657_v27, inf  ;;  %v662_v34 = vsel %vm606_vm2, %v658_v28, inf  ;;  %v663_v35 = vsel %vm606_vm2, %v659_v30, inf }
 0x198   : > { %v664_v36 = vsel %vm606_vm2, %v660_v32, inf  ;;  %v665_v38 = vmin.f32 %v661_v33, %v662_v34  ;;  %v1996_v11 = vsel %vm644_vm12, 1.0, %v2578_v10  ;;  %v1994_v12 = vsel %vm642_vm10, 1.0, %v2578_v10 }
 0x199   : > { %v666_v39 = vmin.f32 %v663_v35, %v664_v36  ;;  %v1993_v13 = vsel %vm641_vm9, 1.0, %v2578_v10 }
 0x19b   : > { %v667_v41 = vmin.f32 %v665_v38, %v666_v39 }
 0x19d   : > { %v668_v42 = vrot.slane %v667_v41, 4 }
 0x19f   : > { %v669_v43 = vmin.f32 %v667_v41, %v668_v42 }
 0x1a1   : > { %v670_v44 = vrot.slane %v669_v43, 2 }
 0x1a3   : > { %v671_v45 = vmin.f32 %v669_v43, %v670_v44 }
 0x1a5   : > { %v672_v46 = vrot.slane %v671_v45, 1 }
 0x1a7   : > { %v673_v47 = vmin.f32 %v671_v45, %v672_v46 }
 0x1a9   : > { %vm674_vm13 = vcmp.le.f32.partialorder %v657_v27, %v673_v47  ;;  %vm675_vm14 = vcmp.le.f32.partialorder %v658_v28, %v673_v47  ;;  %vm676_vm15 = vcmp.le.f32.partialorder %v659_v30, %v673_v47  ;;  %vm677_vm5 = vcmp.le.f32.partialorder %v660_v32, %v673_v47 }
 0x1aa   : > { %v678_v48 = vsel %vm674_vm13, %v2929_v4, 32.0  ;;  %v679_v49 = vsel %vm675_vm14, %v2932_v5, 32.0  ;;  %v680_v50 = vsel %vm676_vm15, %v2935_v6, 32.0  ;;  %v681_v51 = vsel %vm677_vm5, %v2938_v7, 32.0 }
 0x1ab   : > { %v682_v52 = vsel %vm606_vm2, %v678_v48, inf  ;;  %v683_v53 = vsel %vm606_vm2, %v679_v49, inf  ;;  %v684_v54 = vsel %vm606_vm2, %v680_v50, inf  ;;  %v685_v55 = vsel %vm606_vm2, %v681_v51, inf }
 0x1ac   : > { %v686_v56 = vmin.f32 %v682_v52, %v683_v53  ;;  %v687_v58 = vmin.f32 %v684_v54, %v685_v55 }
 0x1ae   : > { %v688_v59 = vmin.f32 %v686_v56, %v687_v58 }
 0x1b0   : > { %v689_v61 = vrot.slane %v688_v59, 4 }
 0x1b2   : > { %v690_v62 = vmin.f32 %v688_v59, %v689_v61  ;;  %v463_v59 = vand.u32 127, %v457_v57 }
 0x1b4   : > { %v691_v2 = vrot.slane %v690_v62, 2  ;;  %vm464_vm15 = vcmp.eq.s32.totalorder %v2917_v60, %v463_v59  ;;  %vm467_vm5 = vcmp.eq.s32.totalorder %v2926_v1, %v463_v59 }
 0x1b5   : > { %v3034_v57 = vsel %vm467_vm5, 1.0, %v2578_v10 }
 0x1b6   : > { %v692_v3 = vmin.f32 %v690_v62, %v691_v2 }
 0x1b8   : > { %v693_v8 = vrot.slane %v692_v3, 1 }
 0x1ba   : > { %v694_v9 = vmin.f32 %v692_v3, %v693_v8 }
 0x1bc   : > { %vm695_vm6 = vcmp.eq.f32.partialorder %v2929_v4, %v694_v9  ;;  %vm696_vm7 = vcmp.eq.f32.partialorder %v2932_v5, %v694_v9  ;;  %vm697_vm8 = vcmp.eq.f32.partialorder %v2935_v6, %v694_v9  ;;  %vm698_vm13 = vcmp.eq.f32.partialorder %v2938_v7, %v694_v9 }
 0x1bd   : > { %v711_v14 = vsel %vm695_vm6, 3e+38, %v657_v27  ;;  %v712_v15 = vsel %vm696_vm7, 3e+38, %v658_v28  ;;  %v713_v16 = vsel %vm697_vm8, 3e+38, %v659_v30 }
 0x1be   : > { %v714_v17 = vsel %vm698_vm13, 3e+38, %v660_v32  ;;  %v715_v18 = vsel %vm606_vm2, %v711_v14, inf  ;;  %v716_v19 = vsel %vm606_vm2, %v712_v15, inf  ;;  %v717_v20 = vsel %vm606_vm2, %v713_v16, inf }
 0x1bf   : > { %v718_v21 = vsel %vm606_vm2, %v714_v17, inf  ;;  %v719_v22 = vmin.f32 %v715_v18, %v716_v19  ;;  %v1998_v23 = vsel %vm696_vm7, 1.0, %v2578_v10  ;;  %v1997_v24 = vsel %vm695_vm6, 1.0, %v2578_v10 }
 0x1c0   : > { %v720_v33 = vmin.f32 %v717_v20, %v718_v21  ;;  %v708_v27 = vadd.f32 %v1998_v23, %v1994_v12  ;;  %v707_v28 = vadd.f32 %v1997_v24, %v1993_v13  ;;  %v2000_v34 = vsel %vm698_vm13, 1.0, %v2578_v10 }
 0x1c1   : > { %v710_v30 = vadd.f32 %v2000_v34, %v1996_v11  ;;  %v1995_v32 = vsel %vm643_vm11, 1.0, %v2578_v10  ;;  %v1999_v35 = vsel %vm697_vm8, 1.0, %v2578_v10  ;;  %vm465_vm11 = vcmp.eq.s32.totalorder %v2920_v63, %v463_v59 }
 0x1c2   : > { %v721_v36 = vmin.f32 %v719_v22, %v720_v33  ;;  %v709_v38 = vadd.f32 %v1999_v35, %v1995_v32  ;;  %vm466_vm6 = vcmp.eq.s32.totalorder %v2923_v0, %v463_v59  ;;  %v3028_v8 = vsel %vm465_vm11, 1.0, %v2578_v10 }
 0x1c3   : > { %v3031_v9 = vsel %vm464_vm15, 1.0, %v2578_v10  ;;  %v3037_v11 = vsel %vm466_vm6, 1.0, %v2578_v10 }
 0x1c4   : > { %v722_v39 = vrot.slane %v721_v36, 4 }
 0x1c6   : > { %v723_v41 = vmin.f32 %v721_v36, %v722_v39 }
 0x1c8   : > { %v724_v42 = vrot.slane %v723_v41, 2 }
 0x1ca   : > { %v725_v43 = vmin.f32 %v723_v41, %v724_v42  ;;  %v2377_v41 = vld [vmem:[%s3371_s5 + $0x40] sm:$0xff]  }
 0x1cb   : > { %v2378_v42 = vld [vmem:[%s3371_s5] sm:$0xff]   ;;  %2069 = vmatprep.subr.bf16.mxu1 %v2377_v41 }
 0x1cc   : > { %v726_v44 = vrot.slane %v725_v43, 1  ;;  %2070 = vmatpush3.bf16.msra.mxu1 %v2378_v42 }
 0x1ce   : > { %v727_v45 = vmin.f32 %v725_v43, %v726_v44  ;;  %v2379_v43 = vld [vmem:[%s3371_s5 + $0x48] sm:$0xff]  }
 0x1cf   : > { %v2380_v44 = vld [vmem:[%s3371_s5 + $0x8] sm:$0xff]   ;;  %2071 = vmatprep.subr.bf16.mxu1 %v2379_v43 }
 0x1d0   : > { %vm728_vm9 = vcmp.le.f32.partialorder %v711_v14, %v727_v45  ;;  %vm729_vm10 = vcmp.le.f32.partialorder %v712_v15, %v727_v45  ;;  %vm730_vm12 = vcmp.le.f32.partialorder %v713_v16, %v727_v45  ;;  %vm731_vm14 = vcmp.le.f32.partialorder %v714_v17, %v727_v45  ;;  %v2381_v45 = vld [vmem:[%s3371_s5 + $0x50] sm:$0xff]   ;;  %2072 = vmatpush3.bf16.msra.mxu1 %v2380_v44 }
 0x1d1   : > { %v732_v46 = vsel %vm728_vm9, %v2929_v4, 32.0  ;;  %v733_v25 = vsel %vm729_vm10, %v2932_v5, 32.0  ;;  %v734_v47 = vsel %vm730_vm12, %v2935_v6, 32.0  ;;  %v735_v48 = vsel %vm731_vm14, %v2938_v7, 32.0  ;;  %2073 = vmatprep.subr.bf16.mxu1 %v2381_v45 }
 0x1d2   : > { %v736_v49 = vsel %vm606_vm2, %v732_v46, inf  ;;  %v737_v50 = vsel %vm606_vm2, %v733_v25, inf  ;;  %v738_v51 = vsel %vm606_vm2, %v734_v47, inf  ;;  %v739_v52 = vsel %vm606_vm2, %v735_v48, inf  ;;  %v2382_v46 = vld [vmem:[%s3371_s5 + $0x10] sm:$0xff]   ;;  %v2383_v25 = vld [vmem:[%s3371_s5 + $0x58] sm:$0xff]  }
 0x1d3   : > { %v740_v53 = vmin.f32 %v736_v49, %v737_v50  ;;  %v741_v54 = vmin.f32 %v738_v51, %v739_v52  ;;  %v2384_v47 = vld [vmem:[%s3371_s5 + $0x18] sm:$0xff]   ;;  %v2385_v48 = vld [vmem:[%s3371_s5 + $0x60] sm:$0xff]  }
 0x1d4   : > { %2074 = vmatpush3.bf16.msra.mxu1 %v2382_v46  ;;  %v2386_v49 = vld [vmem:[%s3371_s5 + $0x20] sm:$0xff]  }
 0x1d5   : > { %v742_v55 = vmin.f32 %v740_v53, %v741_v54  ;;  %2075 = vmatprep.subr.bf16.mxu1 %v2383_v25 }
 0x1d7   : > { %v743_v56 = vrot.slane %v742_v55, 4 }
 0x1d8   : > { %2076 = vmatpush3.bf16.msra.mxu1 %v2384_v47 }
 0x1d9   : > { %v744_v58 = vmin.f32 %v742_v55, %v743_v56  ;;  %2077 = vmatprep.subr.bf16.mxu1 %v2385_v48 }
 0x1db   : > { %v745_v61 = vrot.slane %v744_v58, 2 }
 0x1dc   : > { %2078 = vmatpush3.bf16.msra.mxu1 %v2386_v49 }
 0x1dd   : > { %v746_v62 = vmin.f32 %v744_v58, %v745_v61 }
 0x1df   : > { %v747_v2 = vrot.slane %v746_v62, 1 }
 0x1e1   : > { %v748_v3 = vmin.f32 %v746_v62, %v747_v2 }
 0x1e3   : > { %vm750_vm7 = vcmp.eq.f32.partialorder %v2932_v5, %v748_v3  ;;  %vm749_vm8 = vcmp.eq.f32.partialorder %v2929_v4, %v748_v3  ;;  %vm752_vm13 = vcmp.eq.f32.partialorder %v2938_v7, %v748_v3  ;;  %vm751_vm9 = vcmp.eq.f32.partialorder %v2935_v6, %v748_v3 }
 0x1e4   : > { %v2002_v63 = vsel %vm750_vm7, 1.0, %v2578_v10  ;;  %v2001_v0 = vsel %vm749_vm8, 1.0, %v2578_v10  ;;  %v2004_v1 = vsel %vm752_vm13, 1.0, %v2578_v10  ;;  %v2003_v12 = vsel %vm751_vm9, 1.0, %v2578_v10 }
 0x1e5   : > { %v762_v13 = vadd.f32 %v2002_v63, %v708_v27  ;;  %v761_v14 = vadd.f32 %v2001_v0, %v707_v28  ;;  %v764_v15 = vadd.f32 %v2004_v1, %v710_v30  ;;  %v763_v16 = vadd.f32 %v2003_v12, %v709_v38  ;;  %v901_v28 = vpop.f32.mrb[0].mxu1 }
 0x1e6   : > { %v903_v34 = vpop.f32.mrb[1].mxu1 }
 0x1e7   : > { %v3048_v17 = vadd.f32 %v3028_v8, %v762_v13  ;;  %v3051_v18 = vadd.f32 %v3031_v9, %v761_v14  ;;  %v3054_v19 = vadd.f32 %v3034_v57, %v764_v15  ;;  %v3057_v20 = vadd.f32 %v3037_v11, %v763_v16  ;;  %v905_v30 = vpop.f32.mrb[2].mxu1  ;;  %v2387_v16 = vld [vmem:[%s3371_s5 + $0x68] sm:$0xff]  }
 0x1e8   : > { %v907_v32 = vpop.f32.mrb[3].mxu1  ;;  %2079 = vmatprep.subr.bf16.mxu1 %v2387_v16 }
 0x1e9   : > { %v772_v21 = vsel %vm606_vm2, %v3048_v17, 0.0  ;;  %v769_v22 = vsel %vm606_vm2, %v3051_v18, 0.0  ;;  %v920_v23 = vpack.c.bf16 %v3048_v17, %v3051_v18  ;;  %v921_v24 = vpack.c.bf16 %v3054_v19, %v3057_v20  ;;  %v911_v35 = vpop.f32.mrb[4].mxu1  ;;  %v2389_v17 = vld [vmem:[%s3371_s5 + $0x70] sm:$0xff]   ;;  %v2391_v18 = vld [vmem:[%s3371_s5 + $0x78] sm:$0xff]  }
 0x1ea   : > { %773 = vadd.xlane.f32.xlu1 %v772_v21  ;;  %770 = vadd.xlane.f32.xlu0 %v769_v22  ;;  %v778_v33 = vsel %vm606_vm2, %v3054_v19, 0.0  ;;  %v775_v27 = vsel %vm606_vm2, %v3057_v20, 0.0  ;;  %v913_v36 = vpop.f32.mrb[5].mxu1  ;;  %v2388_v21 = vld [vmem:[%s3371_s5 + $0x28] sm:$0xff]   ;;  %v2392_v19 = vld [vmem:[%s3371_s5 + $0x38] sm:$0xff]   ;;  %v1004_v20 = vsub.s32 0, %v2917_v60 }
 0x1eb   : > { %v915_v38 = vpop.f32.mrb[6].mxu1  ;;  %2080 = vmatpush3.bf16.msra.mxu1 %v2388_v21  ;;  %v496_v22 = vld [vmem:[%s3370_s4] sm:$0x3] }
 0x1ec   : > { %v917_v39 = vpop.f32.mrb[7].mxu1  ;;  %2081 = vmatprep.subr.bf16.mxu1 %v2389_v17 }
 0x1ee   : > { %779 = vadd.xlane.f32.xlu1 %v778_v33  ;;  %776 = vadd.xlane.f32.xlu0 %v775_v27 }
 0x277   : > { %v774_v50 = vpop.xlane.xlu1 %773  ;;  %v771_v51 = vpop.xlane.xlu0 %770 }
 0x278   : > { %2393 = vrsqrt.f32 %v774_v50 }
 0x279   : > { %2395 = vrsqrt.f32 %v771_v51 }
 0x27b   : > { %v780_v52 = vpop.xlane.xlu1 %779  ;;  %v777_v53 = vpop.xlane.xlu0 %776 }
 0x27c   : > { %2397 = vrsqrt.f32 %v780_v52 }
 0x27d   : > { %2399 = vrsqrt.f32 %v777_v53 }
 0x282   : > { %v2394_v54 = vpop.eup %2393 }
 0x283   : > { %v2396_v55 = vpop.eup %2395  ;;  %v924_v56 = vmul.f32 %v2394_v54, %v905_v30  ;;  %v925_v58 = vmul.f32 %v2394_v54, %v907_v32 }
 0x284   : > { %v922_v59 = vmul.f32 %v2396_v55, %v901_v28  ;;  %v923_v61 = vmul.f32 %v2396_v55, %v903_v34 }
 0x286   : > { %v3101_v62 = vpop.eup %2397  ;;  %v930_v2 = vpack.c.bf16 %v924_v56, %v922_v59  ;;  %v931_v3 = vpack.c.bf16 %v925_v58, %v923_v61 }
 0x287   : > { %v2400_v63 = vpop.eup %2399  ;;  %v928_v0 = vmul.f32 %v3101_v62, %v915_v38  ;;  %v929_v1 = vmul.f32 %v3101_v62, %v917_v39 }
 0x288   : > { %v926_v12 = vmul.f32 %v2400_v63, %v911_v35  ;;  %v927_v13 = vmul.f32 %v2400_v63, %v913_v36  ;;  %940 = vmatprep.subr.bf16.mxu0 %v931_v3 }
 0x289   : > { %941 = vmatpush1.bf16.msra.mxu0 %v930_v2 }
 0x28a   : > { %v932_v14 = vpack.c.bf16 %v928_v0, %v926_v12  ;;  %v933_v15 = vpack.c.bf16 %v929_v1, %v927_v13 }
 0x28c   : > { %942 = vmatprep.subr.bf16.mxu0 %v933_v15 }
 0x28d   : > { %943 = vmatpush1.bf16.msra.mxu0 %v932_v14 }
 0x290   : > { %2021 = vmatmul.mubr.msk.bf16.vlgmr.msra.gmra.mrb[4].mxu0 %vm606_vm2, %v920_v23  ;;  %v1008_v23 = vsub.s32 1, %v2917_v60 }
 0x291   : > { %982 = vmatprep.mubr.bf16.mxu0 %v2577_v26  ;;  %v2390_v26 = vld [vmem:[%s3371_s5 + $0x30] sm:$0xff]  }
 0x292   : > { %2082 = vmatpush3.bf16.msra.mxu1 %v2390_v26  ;;  %v1009_v27 = vrot.slane %v496_v22, %v1008_v23 }
 0x293   : > { %2083 = vmatprep.subr.bf16.mxu1 %v2391_v18 }
 0x296   : > { %2084 = vmatpush3.bf16.msra.mxu1 %v2392_v19 }
 0x298   : > { %2022 = vmatmul.mubr.msk.bf16.gmra.mrb[8].mxu0 %vm606_vm2, %v921_v24  ;;  %v1005_v24 = vrot.slane %v496_v22, %v1004_v20 }
 0x363   : > { %v974_v33 = vpop.f32.mrb[4].mxu0 }
 0x364   : > { %v993_v28 = vmul.f32 %v2396_v55, %v974_v33  ;;  %v976_v34 = vpop.f32.mrb[5].mxu0 }
 0x365   : > { %v994_v30 = vmul.f32 %v2396_v55, %v976_v34  ;;  %v978_v32 = vpop.f32.mrb[6].mxu0 }
 0x366   : > { %v1012_v35 = vadd.f32 %v1005_v24, %v993_v28  ;;  %v995_v36 = vmul.f32 %v2394_v54, %v978_v32  ;;  %v980_v38 = vpop.f32.mrb[7].mxu0 }
 0x367   : > { %v1013_v39 = vadd.f32 %v1009_v27, %v994_v30  ;;  %v996_v41 = vmul.f32 %v2394_v54, %v980_v38 }
 0x368   : > { %vm1020_vm10 = vcmp.ge.f32.partialorder %v1012_v35, 0.0  ;;  %v1028_v42 = vmul.f32 0.01, %v1012_v35  ;;  %v1014_v43 = vadd.f32 %v1005_v24, %v995_v36 }
 0x369   : > { %v1015_v44 = vadd.f32 %v1009_v27, %v996_v41  ;;  %vm1021_vm12 = vcmp.ge.f32.partialorder %v1013_v39, 0.0  ;;  %v1029_v45 = vmul.f32 0.01, %v1013_v39 }
 0x36a   : > { %vm1022_vm14 = vcmp.ge.f32.partialorder %v1014_v43, 0.0  ;;  %v1030_v60 = vmul.f32 0.01, %v1014_v43  ;;  %v1036_v46 = vsel %vm1020_vm10, %v1012_v35, %v1028_v42 }
 0x36b   : > { %vm1023_vm11 = vcmp.ge.f32.partialorder %v1015_v44, 0.0  ;;  %v1031_v25 = vmul.f32 0.01, %v1015_v44  ;;  %v984_v47 = vpop.f32.mrb[8].mxu0  ;;  %v1037_v48 = vsel %vm1021_vm12, %v1013_v39, %v1029_v45  ;;  %v1077_v49 = vmul.f32 %v1036_v46, %v1036_v46 }
 0x36c   : > { %v1038_v50 = vsel %vm1022_vm14, %v1014_v43, %v1030_v60  ;;  %v997_v51 = vmul.f32 %v2400_v63, %v984_v47  ;;  %v986_v52 = vpop.f32.mrb[9].mxu0  ;;  %1161 = vmatprep.mubr.f32.mxu0 %v1037_v48  ;;  %v1078_v53 = vmul.f32 %v1037_v48, %v1037_v48 }
 0x36d   : > { %v998_v54 = vmul.f32 %v2400_v63, %v986_v52  ;;  %v988_v55 = vpop.f32.mrb[10].mxu0  ;;  %v1039_v56 = vsel %vm1023_vm11, %v1015_v44, %v1031_v25  ;;  %v2229_v58 = vpack.c.bf16 %v1038_v50, %v1036_v46  ;;  %v1079_v59 = vmul.f32 %v1038_v50, %v1038_v50 }
 0x36e   : > { %v1016_v61 = vadd.f32 %v1005_v24, %v997_v51  ;;  %v999_v2 = vmul.f32 %v3101_v62, %v988_v55  ;;  %v990_v3 = vpop.f32.mrb[11].mxu0  ;;  %v1085_v0 = vadd.f32 %v1078_v53, %v1077_v49  ;;  %v2227_v1 = vpack.c.bf16 %v1039_v56, %v1037_v48 }
 0x36f   : > { %v1017_v12 = vadd.f32 %v1009_v27, %v998_v54  ;;  %v1000_v13 = vmul.f32 %v3101_v62, %v990_v3  ;;  %v1080_v14 = vmul.f32 %v1039_v56, %v1039_v56 }
 0x370   : > { %vm1024_vm15 = vcmp.ge.f32.partialorder %v1016_v61, 0.0  ;;  %v1032_v15 = vmul.f32 0.01, %v1016_v61  ;;  %v1018_v16 = vadd.f32 %v1005_v24, %v999_v2  ;;  %1086 = vadd.xlane.f32.xlu0 %v1085_v0  ;;  %2228 = vmatprep.subr.bf16.mxu0 %v2227_v1 }
 0x371   : > { %vm1025_vm5 = vcmp.ge.f32.partialorder %v1017_v12, 0.0  ;;  %v1033_v63 = vmul.f32 0.01, %v1017_v12  ;;  %v1019_v21 = vadd.f32 %v1009_v27, %v1000_v13  ;;  %1504 = vmatprep.mubr.bf16.mxu1 %v2227_v1  ;;  %2230 = vmatpush1.bf16.xpose.msra.mxu0 %v2229_v58  ;;  %v1088_v17 = vadd.f32 %v1080_v14, %v1079_v59 }
 0x372   : > { %vm1026_vm6 = vcmp.ge.f32.partialorder %v1018_v16, 0.0  ;;  %v1034_v26 = vmul.f32 0.01, %v1018_v16  ;;  %1505 = vmatmul.mubr.bf16.vlgmr.msra.gmra.mrb[8].mxu1 %v2229_v58  ;;  %v1040_v18 = vsel %vm1024_vm15, %v1016_v61, %v1032_v15 }
 0x373   : > { %vm1027_vm7 = vcmp.ge.f32.partialorder %v1019_v21, 0.0  ;;  %v1035_v19 = vmul.f32 0.01, %v1019_v21  ;;  %1089 = vadd.xlane.f32.xlu1 %v1088_v17  ;;  %v1041_v62 = vsel %vm1025_vm5, %v1017_v12, %v1033_v63  ;;  %v1081_v20 = vmul.f32 %v1040_v18, %v1040_v18 }
 0x374   : > { %v1042_v22 = vsel %vm1026_vm6, %v1018_v16, %v1034_v26  ;;  %v1082_v23 = vmul.f32 %v1041_v62, %v1041_v62 }
 0x375   : > { %v1043_v24 = vsel %vm1027_vm7, %v1019_v21, %v1035_v19  ;;  %v2233_v33 = vpack.c.bf16 %v1042_v22, %v1040_v18  ;;  %v1083_v28 = vmul.f32 %v1042_v22, %v1042_v22 }
 0x376   : > { %v1091_v34 = vadd.f32 %v1082_v23, %v1081_v20  ;;  %v2231_v30 = vpack.c.bf16 %v1043_v24, %v1041_v62  ;;  %v1084_v27 = vmul.f32 %v1043_v24, %v1043_v24 }
 0x378   : > { %1092 = vadd.xlane.f32.xlu0 %v1091_v34  ;;  %2232 = vmatprep.subr.bf16.mxu0 %v2231_v30  ;;  %v1094_v32 = vadd.f32 %v1084_v27, %v1083_v28 }
 0x379   : > { %1512 = vmatprep.mubr.bf16.mxu1 %v2231_v30  ;;  %2234 = vmatpush1.bf16.xpose.msra.mxu0 %v2233_v33 }
 0x37a   : > { %1513 = vmatmul.mubr.bf16.gmra.mrb[12].mxu1 %v2233_v33  ;;  %1095 = vadd.xlane.f32.xlu1 %v1094_v32 }
 0x380   : > { %1162 = vmatmul.mubr.f32.vlgmr.msra.gmra.mrb[12].mxu0 %v1036_v46 }
 0x381   : > { %1166 = vmatprep.mubr.f32.mxu0 %v1039_v56 }
 0x384   : > { %1167 = vmatmul.mubr.f32.gmra.mrb[14].mxu0 %v1038_v50 }
 0x385   : > { %1171 = vmatprep.mubr.f32.mxu0 %v1041_v62 }
 0x388   : > { %1172 = vmatmul.mubr.f32.gmra.mrb[16].mxu0 %v1040_v18 }
 0x389   : > { %1176 = vmatprep.mubr.f32.mxu0 %v1043_v24 }
 0x38c   : > { %1177 = vmatmul.mubr.f32.gmra.mrb[18].mxu0 %v1042_v22 }
 0x3fd   : > { %v1087_v50 = vpop.xlane.xlu0 %1086 }
 0x400   : > { %v1090_v55 = vpop.xlane.xlu1 %1089 }
 0x405   : > { %v1093_v0 = vpop.xlane.xlu0 %1092 }
 0x407   : > { %v1096_v21 = vpop.xlane.xlu1 %1095 }
 0x445   : > { %v2085_v35 = vpop.f32.mrb[8].mxu1 }
 0x446   : > { %v2086_v36 = vpop.f32.mrb[9].mxu1 }
 0x447   : > { %v3139_v38 = vadd.f32 %v2086_v36, %v2085_v35  ;;  %v2088_v39 = vpop.f32.mrb[10].mxu1 }
 0x448   : > { %v2089_v41 = vpop.f32.mrb[11].mxu1 }
 0x449   : > { %v3141_v42 = vadd.f32 %v2089_v41, %v2088_v39 }
 0x44d   : > { %v2091_v43 = vpop.f32.mrb[12].mxu1 }
 0x44e   : > { %v2092_v44 = vpop.f32.mrb[13].mxu1 }
 0x44f   : > { %v3143_v45 = vadd.f32 %v2092_v44, %v2091_v43  ;;  %v2094_v60 = vpop.f32.mrb[14].mxu1 }
 0x450   : > { %v2095_v46 = vpop.f32.mrb[15].mxu1 }
 0x451   : > { %v3145_v25 = vadd.f32 %v2095_v46, %v2094_v60 }
 0x453   : > { %v1163_v47 = vpop.f32.mrb[12].mxu0 }
 0x454   : > { %v1182_v48 = vmul.f32 2.0, %v1163_v47  ;;  %v1165_v49 = vpop.f32.mrb[13].mxu0 }
 0x456   : > { %v1186_v51 = vsub.f32 %v1087_v50, %v1182_v48 }
 0x457   : > { %v1168_v52 = vpop.f32.mrb[14].mxu0 }
 0x458   : > { %v1183_v53 = vmul.f32 2.0, %v1168_v52  ;;  %v1170_v54 = vpop.f32.mrb[15].mxu0  ;;  %v1190_v56 = vsel %vm453_vm1, 3e+38, %v1186_v51 }
 0x459   : > { %v1194_v1 = vsel %vm606_vm2, %v1190_v56, inf }
 0x45a   : > { %v1187_v58 = vsub.f32 %v1090_v55, %v1183_v53 }
 0x45b   : > { %v1173_v59 = vpop.f32.mrb[16].mxu0 }
 0x45c   : > { %v1191_v61 = vsel %vm454_vm0, 3e+38, %v1187_v58  ;;  %v1184_v2 = vmul.f32 2.0, %v1173_v59  ;;  %v1175_v3 = vpop.f32.mrb[17].mxu0 }
 0x45d   : > { %v1195_v12 = vsel %vm606_vm2, %v1191_v61, inf }
 0x45e   : > { %v1198_v13 = vmin.f32 %v1194_v1, %v1195_v12  ;;  %v1188_v14 = vsub.f32 %v1093_v0, %v1184_v2 }
 0x45f   : > { %v1178_v15 = vpop.f32.mrb[18].mxu0 }
 0x460   : > { %v1185_v16 = vmul.f32 2.0, %v1178_v15  ;;  %v1180_v63 = vpop.f32.mrb[19].mxu0  ;;  %v1192_v31 = vsel %vm455_vm4, 3e+38, %v1188_v14 }
 0x461   : > { %v1196_v26 = vsel %vm606_vm2, %v1192_v31, inf }
 0x462   : > { %v1189_v17 = vsub.f32 %v1096_v21, %v1185_v16 }
 0x464   : > { %v1193_v29 = vsel %vm456_vm3, 3e+38, %v1189_v17 }
 0x465   : > { %v1197_v18 = vsel %vm606_vm2, %v1193_v29, inf }
 0x466   : > { %v1199_v19 = vmin.f32 %v1196_v26, %v1197_v18 }
 0x468   : > { %v1200_v62 = vmin.f32 %v1198_v13, %v1199_v19 }
 0x46a   : > { %v1201_v20 = vrot.slane %v1200_v62, 4 }
 0x46c   : > { %v1202_v22 = vmin.f32 %v1200_v62, %v1201_v20 }
 0x46e   : > { %v1203_v23 = vrot.slane %v1202_v22, 2 }
 0x470   : > { %v1204_v24 = vmin.f32 %v1202_v22, %v1203_v23 }
 0x472   : > { %v1205_v33 = vrot.slane %v1204_v24, 1 }
 0x474   : > { %v1206_v28 = vmin.f32 %v1204_v24, %v1205_v33 }
 0x476   : > { %vm1207_vm0 = vcmp.le.f32.partialorder %v1190_v56, %v1206_v28  ;;  %vm1208_vm1 = vcmp.le.f32.partialorder %v1191_v61, %v1206_v28  ;;  %vm1209_vm8 = vcmp.le.f32.partialorder %v1192_v31, %v1206_v28  ;;  %vm1210_vm4 = vcmp.le.f32.partialorder %v1193_v29, %v1206_v28 }
 0x477   : > { %v1211_v40 = vsel %vm1207_vm0, %v2929_v4, 32.0  ;;  %v1212_v37 = vsel %vm1208_vm1, %v2932_v5, 32.0  ;;  %v1213_v34 = vsel %vm1209_vm8, %v2935_v6, 32.0  ;;  %v1214_v30 = vsel %vm1210_vm4, %v2938_v7, 32.0 }
 0x478   : > { %v1215_v27 = vsel %vm606_vm2, %v1211_v40, inf  ;;  %v1216_v32 = vsel %vm606_vm2, %v1212_v37, inf  ;;  %v1217_v35 = vsel %vm606_vm2, %v1213_v34, inf  ;;  %v1218_v36 = vsel %vm606_vm2, %v1214_v30, inf }
 0x479   : > { %v1219_v39 = vmin.f32 %v1215_v27, %v1216_v32  ;;  %v1220_v41 = vmin.f32 %v1217_v35, %v1218_v36 }
 0x47b   : > { %v1221_v43 = vmin.f32 %v1219_v39, %v1220_v41 }
 0x47d   : > { %v1222_v44 = vrot.slane %v1221_v43, 4 }
 0x47f   : > { %v1223_v60 = vmin.f32 %v1221_v43, %v1222_v44 }
 0x481   : > { %v1224_v46 = vrot.slane %v1223_v60, 2 }
 0x483   : > { %v1225_v47 = vmin.f32 %v1223_v60, %v1224_v46 }
 0x485   : > { %v1226_v48 = vrot.slane %v1225_v47, 1 }
 0x487   : > { %v1227_v49 = vmin.f32 %v1225_v47, %v1226_v48 }
 0x489   : > { %vm1230_vm3 = vcmp.eq.f32.partialorder %v2935_v6, %v1227_v49  ;;  %vm1231_vm13 = vcmp.eq.f32.partialorder %v2938_v7, %v1227_v49  ;;  %vm1228_vm9 = vcmp.eq.f32.partialorder %v2929_v4, %v1227_v49  ;;  %vm1229_vm10 = vcmp.eq.f32.partialorder %v2932_v5, %v1227_v49 }
 0x48a   : > { %v1246_v50 = vsel %vm1230_vm3, 3e+38, %v1192_v31  ;;  %v1247_v51 = vsel %vm1231_vm13, 3e+38, %v1193_v29  ;;  %v1244_v54 = vsel %vm1228_vm9, 3e+38, %v1190_v56 }
 0x48b   : > { %v1250_v52 = vsel %vm606_vm2, %v1246_v50, inf  ;;  %v1251_v53 = vsel %vm606_vm2, %v1247_v51, inf  ;;  %v1245_v55 = vsel %vm1229_vm10, 3e+38, %v1191_v61  ;;  %v1248_v59 = vsel %vm606_vm2, %v1244_v54, inf }
 0x48c   : > { %v1253_v58 = vmin.f32 %v1250_v52, %v1251_v53  ;;  %v1249_v2 = vsel %vm606_vm2, %v1245_v55, inf  ;;  %v2024_v40 = vsel %vm1229_vm10, 1.0, %v2578_v10  ;;  %v2023_v37 = vsel %vm1228_vm9, 1.0, %v2578_v10 }
 0x48d   : > { %v1252_v3 = vmin.f32 %v1248_v59, %v1249_v2  ;;  %v2026_v34 = vsel %vm1231_vm13, 1.0, %v2578_v10  ;;  %v2025_v30 = vsel %vm1230_vm3, 1.0, %v2578_v10 }
 0x48f   : > { %v1254_v0 = vmin.f32 %v1252_v3, %v1253_v58 }
 0x491   : > { %v1255_v1 = vrot.slane %v1254_v0, 4 }
 0x493   : > { %v1256_v12 = vmin.f32 %v1254_v0, %v1255_v1 }
 0x495   : > { %v1257_v13 = vrot.slane %v1256_v12, 2 }
 0x497   : > { %v1258_v14 = vmin.f32 %v1256_v12, %v1257_v13 }
 0x499   : > { %v1259_v15 = vrot.slane %v1258_v14, 1 }
 0x49b   : > { %v1260_v16 = vmin.f32 %v1258_v14, %v1259_v15 }
 0x49d   : > { %vm1261_vm12 = vcmp.le.f32.partialorder %v1244_v54, %v1260_v16  ;;  %vm1262_vm14 = vcmp.le.f32.partialorder %v1245_v55, %v1260_v16  ;;  %vm1263_vm11 = vcmp.le.f32.partialorder %v1246_v50, %v1260_v16  ;;  %vm1264_vm15 = vcmp.le.f32.partialorder %v1247_v51, %v1260_v16 }
 0x49e   : > { %v1265_v56 = vsel %vm1261_vm12, %v2929_v4, 32.0  ;;  %v1266_v61 = vsel %vm1262_vm14, %v2932_v5, 32.0  ;;  %v1267_v63 = vsel %vm1263_vm11, %v2935_v6, 32.0  ;;  %v1268_v21 = vsel %vm1264_vm15, %v2938_v7, 32.0 }
 0x49f   : > { %v1269_v31 = vsel %vm606_vm2, %v1265_v56, inf  ;;  %v1270_v17 = vsel %vm606_vm2, %v1266_v61, inf  ;;  %v1271_v29 = vsel %vm606_vm2, %v1267_v63, inf  ;;  %v1272_v26 = vsel %vm606_vm2, %v1268_v21, inf }
 0x4a0   : > { %v1273_v18 = vmin.f32 %v1269_v31, %v1270_v17  ;;  %v1274_v19 = vmin.f32 %v1271_v29, %v1272_v26  ;;  %vm2580_vm14 = vmmov 0  }
 0x4a1   : > { %2216 = vmatprep.mubr.msk.f32.mxu1 %vm2580_vm14, %v2578_v10 }
 0x4a2   : > { %v1275_v62 = vmin.f32 %v1273_v18, %v1274_v19 }
 0x4a4   : > { %v1276_v20 = vrot.slane %v1275_v62, 4 }
 0x4a6   : > { %v1277_v22 = vmin.f32 %v1275_v62, %v1276_v20 }
 0x4a8   : > { %v1278_v23 = vrot.slane %v1277_v22, 2 }
 0x4aa   : > { %v1279_v24 = vmin.f32 %v1277_v22, %v1278_v23 }
 0x4ac   : > { %v1280_v33 = vrot.slane %v1279_v24, 1 }
 0x4ae   : > { %v1281_v28 = vmin.f32 %v1279_v24, %v1280_v33 }
 0x4b0   : > { %vm1282_vm5 = vcmp.eq.f32.partialorder %v2929_v4, %v1281_v28  ;;  %vm1283_vm6 = vcmp.eq.f32.partialorder %v2932_v5, %v1281_v28  ;;  %vm1284_vm7 = vcmp.eq.f32.partialorder %v2935_v6, %v1281_v28  ;;  %vm1285_vm0 = vcmp.eq.f32.partialorder %v2938_v7, %v1281_v28 }
 0x4b1   : > { %v2028_v27 = vsel %vm1283_vm6, 1.0, %v2578_v10  ;;  %v1298_v32 = vsel %vm1282_vm5, 3e+38, %v1244_v54  ;;  %v1299_v35 = vsel %vm1283_vm6, 3e+38, %v1245_v55  ;;  %v2027_v36 = vsel %vm1282_vm5, 1.0, %v2578_v10 }
 0x4b2   : > { %v1295_v39 = vadd.f32 %v2028_v27, %v2024_v40  ;;  %v1300_v41 = vsel %vm1284_vm7, 3e+38, %v1246_v50  ;;  %v1301_v43 = vsel %vm1285_vm0, 3e+38, %v1247_v51  ;;  %v1302_v44 = vsel %vm606_vm2, %v1298_v32, inf }
 0x4b3   : > { %v1303_v60 = vsel %vm606_vm2, %v1299_v35, inf  ;;  %v1304_v46 = vsel %vm606_vm2, %v1300_v41, inf  ;;  %v1305_v47 = vsel %vm606_vm2, %v1301_v43, inf  ;;  %v1294_v48 = vadd.f32 %v2027_v36, %v2023_v37 }
 0x4b4   : > { %v1306_v49 = vmin.f32 %v1302_v44, %v1303_v60  ;;  %v1307_v52 = vmin.f32 %v1304_v46, %v1305_v47  ;;  %v2030_v53 = vsel %vm1285_vm0, 1.0, %v2578_v10  ;;  %v2029_v54 = vsel %vm1284_vm7, 1.0, %v2578_v10 }
 0x4b5   : > { %v1297_v55 = vadd.f32 %v2030_v53, %v2026_v34  ;;  %v1296_v50 = vadd.f32 %v2029_v54, %v2025_v30  ;;  %v2579_v54 = vmov 0.0|0.0   ;;  %vm1867_vm7 = vcmask 19456  }
 0x4b6   : > { %v1308_v51 = vmin.f32 %v1306_v49, %v1307_v52  ;;  %2265 = vmatprep.subr.bf16.mxu1 %v2579_v54 }
 0x4b8   : > { %v1309_v58 = vrot.slane %v1308_v51, 4 }
 0x4ba   : > { %v1310_v59 = vmin.f32 %v1308_v51, %v1309_v58 }
 0x4bc   : > { %v1311_v2 = vrot.slane %v1310_v59, 2 }
 0x4be   : > { %v1312_v3 = vmin.f32 %v1310_v59, %v1311_v2 }
 0x4c0   : > { %v1313_v0 = vrot.slane %v1312_v3, 1 }
 0x4c2   : > { %v1314_v1 = vmin.f32 %v1312_v3, %v1313_v0 }
 0x4c4   : > { %vm1315_vm1 = vcmp.le.f32.partialorder %v1298_v32, %v1314_v1  ;;  %vm1316_vm8 = vcmp.le.f32.partialorder %v1299_v35, %v1314_v1  ;;  %vm1317_vm4 = vcmp.le.f32.partialorder %v1300_v41, %v1314_v1  ;;  %vm1318_vm3 = vcmp.le.f32.partialorder %v1301_v43, %v1314_v1 }
 0x4c5   : > { %v1319_v12 = vsel %vm1315_vm1, %v2929_v4, 32.0  ;;  %v1320_v13 = vsel %vm1316_vm8, %v2932_v5, 32.0  ;;  %v1321_v14 = vsel %vm1317_vm4, %v2935_v6, 32.0  ;;  %v1322_v15 = vsel %vm1318_vm3, %v2938_v7, 32.0 }
 0x4c6   : > { %v1323_v16 = vsel %vm606_vm2, %v1319_v12, inf  ;;  %v1324_v56 = vsel %vm606_vm2, %v1320_v13, inf  ;;  %v1325_v61 = vsel %vm606_vm2, %v1321_v14, inf  ;;  %v1326_v63 = vsel %vm606_vm2, %v1322_v15, inf }
 0x4c7   : > { %v1327_v21 = vmin.f32 %v1323_v16, %v1324_v56  ;;  %v1328_v31 = vmin.f32 %v1325_v61, %v1326_v63 }
 0x4c9   : > { %v1329_v17 = vmin.f32 %v1327_v21, %v1328_v31 }
 0x4cb   : > { %v1330_v29 = vrot.slane %v1329_v17, 4 }
 0x4cd   : > { %v1331_v26 = vmin.f32 %v1329_v17, %v1330_v29  ;;  %v1684_v17 = vld [vmem:[%s3373_s7] sm:$0xff]  ;;  %v1685_v29 = vld [vmem:[%s3373_s7 + $0x8] sm:$0xff] }
 0x4cf   : > { %v1332_v18 = vrot.slane %v1331_v26, 2 }
 0x4d1   : > { %v1333_v19 = vmin.f32 %v1331_v26, %v1332_v18  ;;  %v1610_v26 = vld [vmem:[%s3368_s2] sm:$0xf]  ;;  %v2242_v18 = vpack.c.bf16 %v1685_v29, %v1684_v17 }
 0x4d3   : > { %v1334_v62 = vrot.slane %v1333_v19, 1 }
 0x4d5   : > { %v1335_v20 = vmin.f32 %v1333_v19, %v1334_v62  ;;  %v1686_v19 = vld [vmem:[%s3373_s7 + $0x10] sm:$0xff]  ;;  %v1687_v62 = vld [vmem:[%s3373_s7 + $0x18] sm:$0xff] }
 0x4d7   : > { %vm1337_vm13 = vcmp.eq.f32.partialorder %v2932_v5, %v1335_v20  ;;  %vm1336_vm9 = vcmp.eq.f32.partialorder %v2929_v4, %v1335_v20  ;;  %vm1339_vm10 = vcmp.eq.f32.partialorder %v2938_v7, %v1335_v20  ;;  %vm1338_vm12 = vcmp.eq.f32.partialorder %v2935_v6, %v1335_v20 }
 0x4d8   : > { %v2032_v22 = vsel %vm1337_vm13, 1.0, %v2578_v10  ;;  %v2031_v23 = vsel %vm1336_vm9, 1.0, %v2578_v10  ;;  %v2034_v24 = vsel %vm1339_vm10, 1.0, %v2578_v10  ;;  %v2033_v33 = vsel %vm1338_vm12, 1.0, %v2578_v10 }
 0x4d9   : > { %v1349_v28 = vadd.f32 %v2032_v22, %v1295_v39  ;;  %v1348_v40 = vadd.f32 %v2031_v23, %v1294_v48  ;;  %v1351_v37 = vadd.f32 %v2034_v24, %v1297_v55  ;;  %v1350_v34 = vadd.f32 %v2033_v33, %v1296_v50  ;;  %v1688_v22 = vld [vmem:[%s3373_s7 + $0x20] sm:$0xff]  ;;  %v1689_v23 = vld [vmem:[%s3373_s7 + $0x28] sm:$0xff]  ;;  %v1690_v33 = vld [vmem:[%s3373_s7 + $0x30] sm:$0xff] }
 0x4da   : > { %v2245_v20 = vpack.c.bf16 %v1687_v62, %v1686_v19  ;;  %v2248_v24 = vpack.c.bf16 %v1689_v23, %v1688_v22 }
 0x4db   : > { %v1353_v5 = vadd.f32 %v3028_v8, %v1349_v28  ;;  %v1352_v4 = vadd.f32 %v3031_v9, %v1348_v40  ;;  %v1355_v7 = vadd.f32 %v3034_v57, %v1351_v37  ;;  %v1354_v6 = vadd.f32 %v3037_v11, %v1350_v34  ;;  %v1692_v40 = vld [vmem:[%s3373_s7 + $0x40] sm:$0xff]  ;;  %v1693_v37 = vld [vmem:[%s3373_s7 + $0x48] sm:$0xff] }
 0x4dc   : > { %v2254_v34 = vpack.c.bf16 %v1693_v37, %v1692_v40 }
 0x4dd   : > { %v1359_v30 = vsel %vm606_vm2, %v1353_v5, 0.0  ;;  %v1356_v27 = vsel %vm606_vm2, %v1352_v4, 0.0  ;;  %v1521_v32 = vpack.c.bf16 %v1353_v5, %v1352_v4  ;;  %v1522_v35 = vpack.c.bf16 %v1355_v7, %v1354_v6  ;;  %v1694_v5 = vld [vmem:[%s3373_s7 + $0x50] sm:$0xff]  ;;  %v1695_v4 = vld [vmem:[%s3373_s7 + $0x58] sm:$0xff] }
 0x4de   : > { %1360 = vadd.xlane.f32.xlu1 %v1359_v30  ;;  %1357 = vadd.xlane.f32.xlu0 %v1356_v27  ;;  %v1365_v36 = vsel %vm606_vm2, %v1355_v7, 0.0  ;;  %v1362_v8 = vsel %vm606_vm2, %v1354_v6, 0.0  ;;  %v2257_v7 = vpack.c.bf16 %v1695_v4, %v1694_v5  ;;  %v1696_v6 = vld [vmem:[%s3373_s7 + $0x60] sm:$0xff]  ;;  %v1697_v30 = vld [vmem:[%s3373_s7 + $0x68] sm:$0xff] }
 0x4df   : > { %2150 = vmatprep.mubr.msk.bf16.mxu0 %vm606_vm2, %v1521_v32  ;;  %v2260_v27 = vpack.c.bf16 %v1697_v30, %v1696_v6  ;;  %v1698_v32 = vld [vmem:[%s3373_s7 + $0x70] sm:$0xff] }
 0x4e2   : > { %1366 = vadd.xlane.f32.xlu1 %v1365_v36  ;;  %1363 = vadd.xlane.f32.xlu0 %v1362_v8  ;;  %v1778_v8 = vld [vmem:[%s3375_s9] sm:$0xff] }
 0x56b   : > { %v1361_v9 = vpop.xlane.xlu1 %1360  ;;  %v1358_v57 = vpop.xlane.xlu0 %1357 }
 0x56c   : > { %2401 = vrsqrt.f32 %v1361_v9  ;;  %v1779_v9 = vld [vmem:[%s3375_s9 + $0x8] sm:$0xff] }
 0x56d   : > { %2403 = vrsqrt.f32 %v1358_v57  ;;  %v1780_v57 = vld [vmem:[%s3375_s9 + $0x10] sm:$0xff] }
 0x56f   : > { %v1367_v11 = vpop.xlane.xlu1 %1366  ;;  %v1364_v39 = vpop.xlane.xlu0 %1363 }
 0x570   : > { %2405 = vrsqrt.f32 %v1367_v11  ;;  %v2266_v11 = vpack.c.bf16 %v1779_v9, %v1778_v8 }
 0x571   : > { %2407 = vrsqrt.f32 %v1364_v39  ;;  %v1781_v39 = vld [vmem:[%s3375_s9 + $0x18] sm:$0xff] }
 0x572   : > { %2267 = vmatpush3.bf16.msra.mxu1 %v2266_v11 }
 0x573   : > { %2268 = vmatprep.subr.bf16.mxu1 %v2579_v54 }
 0x576   : > { %v2402_v41 = vpop.eup %2401 }
 0x577   : > { %v2404_v43 = vpop.eup %2403  ;;  %v1524_v44 = vmul.f32 %v2402_v41, %v3141_v42 }
 0x578   : > { %v1523_v60 = vmul.f32 %v2404_v43, %v3139_v38  ;;  %v2053_v38 = vld [vmem:[#allocation4] ss:$0 sm:$0xff] }
 0x57a   : > { %v2406_v46 = vpop.eup %2405  ;;  %v1527_v47 = vpack.c.bf16 %v1524_v44, %v1523_v60  ;;  %v1783_v44 = vld [vmem:[%s3375_s9 + $0x28] sm:$0xff] }
 0x57b   : > { %v2408_v48 = vpop.eup %2407  ;;  %v1526_v49 = vmul.f32 %v2406_v46, %v3145_v25 }
 0x57c   : > { %2146 = vmatprep.subr.bf16.mxu0 %v1527_v47  ;;  %v1525_v52 = vmul.f32 %v2408_v48, %v3143_v45 }
 0x57d   : > { %2147 = vmatpush3.bf16.msra.mxu0 %v1527_v47 }
 0x57e   : > { %v1528_v53 = vpack.c.bf16 %v1526_v49, %v1525_v52  ;;  %v1785_v49 = vld [vmem:[%s3375_s9 + $0x38] sm:$0xff] }
 0x580   : > { %2148 = vmatprep.subr.bf16.mxu0 %v1528_v53 }
 0x581   : > { %2149 = vmatpush3.bf16.msra.mxu0 %v1528_v53  ;;  %v2055_v53 = vld [vmem:[#allocation6] ss:$0 sm:$0xff] }
 0x582   : > { %2235 = vmatprep.subr.bf16.mxu0 %v2579_v54 }
 0x584   : > { %2151 = vmatmul.mubr.msk.bf16.vlgmr.msra.gmra.mrb[20].mxu0 %vm606_vm2, %v1522_v35  ;;  %v1699_v35 = vld [vmem:[%s3373_s7 + $0x78] sm:$0xff] }
 0x585   : > { %2162 = vmatprep.mubr.msk.f32.mxu0 %vm2580_vm14, %v2578_v10  ;;  %v2263_v36 = vpack.c.bf16 %v1699_v35, %v1698_v32 }
 0x657   : > { %v2152_v42 = vpop.f32.mrb[20].mxu0 }
 0x658   : > { %v1586_v45 = vmul.f32 %v2408_v48, %v2152_v42  ;;  %v1569_v25 = vpop.f32.mrb[21].mxu0  ;;  %v1784_v48 = vld [vmem:[%s3375_s9 + $0x30] sm:$0xff] }
 0x659   : > { %v1584_v55 = vmul.f32 %v2404_v43, %v1569_v25  ;;  %v2153_v50 = vpop.f32.mrb[22].mxu0  ;;  %v1782_v43 = vld [vmem:[%s3375_s9 + $0x20] sm:$0xff]  ;;  %v2275_v52 = vpack.c.bf16 %v1785_v49, %v1784_v48 }
 0x65a   : > { %v1596_v51 = vadd.f32 %v2053_v38, %v1586_v45  ;;  %v1587_v58 = vmul.f32 %v2406_v46, %v2153_v50  ;;  %v1572_v59 = vpop.f32.mrb[23].mxu0  ;;  %v2272_v60 = vpack.c.bf16 %v1783_v44, %v1782_v43 }
 0x65b   : > { %v1594_v2 = vadd.f32 %v2053_v38, %v1584_v55  ;;  %v1585_v3 = vmul.f32 %v2402_v41, %v1572_v59  ;;  %v2269_v41 = vpack.c.bf16 %v1781_v39, %v1780_v57 }
 0x65c   : > { %v1604_v0 = vmul.f32 0.01, %v1596_v51  ;;  %v1597_v1 = vadd.f32 %v2053_v38, %v1587_v58  ;;  %vm1600_vm11 = vcmp.ge.f32.partialorder %v1596_v51, 0.0 }
 0x65d   : > { %v1602_v12 = vmul.f32 0.01, %v1594_v2  ;;  %v1595_v13 = vadd.f32 %v2053_v38, %v1585_v3  ;;  %vm1598_vm15 = vcmp.ge.f32.partialorder %v1594_v2, 0.0  ;;  %2270 = vmatpush3.bf16.msra.mxu1 %v2269_v41 }
 0x65e   : > { %vm1601_vm5 = vcmp.ge.f32.partialorder %v1597_v1, 0.0  ;;  %v1605_v14 = vmul.f32 0.01, %v1597_v1  ;;  %v1608_v16 = vsel %vm1600_vm11, %v1596_v51, %v1604_v0  ;;  %2271 = vmatprep.subr.bf16.mxu1 %v2579_v54 }
 0x65f   : > { %vm1599_vm6 = vcmp.ge.f32.partialorder %v1595_v13, 0.0  ;;  %v1603_v15 = vmul.f32 0.01, %v1595_v13  ;;  %v1606_v61 = vsel %vm1598_vm15, %v1594_v2, %v1602_v12 }
 0x660   : > { %v1609_v56 = vsel %vm1601_vm5, %v1597_v1, %v1605_v14 }
 0x661   : > { %v1607_v63 = vsel %vm1599_vm6, %v1595_v13, %v1603_v15  ;;  %v2239_v21 = vpack.c.bf16 %v1609_v56, %v1608_v16  ;;  %2273 = vmatpush3.bf16.msra.mxu1 %v2272_v60 }
 0x662   : > { %v2236_v31 = vpack.c.bf16 %v1607_v63, %v1606_v61  ;;  %2274 = vmatprep.subr.bf16.mxu1 %v2579_v54 }
 0x664   : > { %2237 = vmatpush3.bf16.msra.mxu0 %v2236_v31 }
 0x665   : > { %2238 = vmatprep.subr.bf16.mxu0 %v2579_v54  ;;  %2276 = vmatpush3.bf16.msra.mxu1 %v2275_v52 }
 0x668   : > { %2240 = vmatpush3.bf16.msra.mxu0 %v2239_v21 }
 0x669   : > { %2241 = vmatprep.subr.bf16.mxu0 %v2579_v54 }
 0x66b   : > { %2163 = vmatmul.mubr.msk.f32.vlgmr.msra.gmra.mrb[24].mxu0 %vm606_vm2, %v1610_v26  ;;  %vm1793_vm2 = vcmask 523264  }
 0x66c   : > { %2243 = vmatpush3.bf16.msra.mxu0 %v2242_v18  ;;  %2197 = vmatprep.mubr.msk.f32.mxu0 %vm2580_vm14, %v2578_v10  ;;  %v1691_v10 = vld [vmem:[%s3373_s7 + $0x38] sm:$0xff] }
 0x66d   : > { %2244 = vmatprep.subr.bf16.mxu0 %v2579_v54  ;;  %v2251_v28 = vpack.c.bf16 %v1691_v10, %v1690_v33 }
 0x670   : > { %2246 = vmatpush3.bf16.msra.mxu0 %v2245_v20 }
 0x671   : > { %2247 = vmatprep.subr.bf16.mxu0 %v2579_v54 }
 0x674   : > { %2249 = vmatpush3.bf16.msra.mxu0 %v2248_v24 }
 0x675   : > { %2250 = vmatprep.subr.bf16.mxu0 %v2579_v54 }
 0x678   : > { %2252 = vmatpush3.bf16.msra.mxu0 %v2251_v28 }
 0x679   : > { %2253 = vmatprep.subr.bf16.mxu0 %v2579_v54 }
 0x67c   : > { %2255 = vmatpush3.bf16.msra.mxu0 %v2254_v34 }
 0x67d   : > { %2256 = vmatprep.subr.bf16.mxu0 %v2579_v54 }
 0x680   : > { %2258 = vmatpush3.bf16.msra.mxu0 %v2257_v7 }
 0x681   : > { %2259 = vmatprep.subr.bf16.mxu0 %v2579_v54 }
 0x684   : > { %2261 = vmatpush3.bf16.msra.mxu0 %v2260_v27 }
 0x685   : > { %2262 = vmatprep.subr.bf16.mxu0 %v2579_v54  ;;  %v2056_v54 = vld [vmem:[#allocation7] ss:$0 sm:$0xff] }
 0x688   : > { %2264 = vmatpush3.bf16.msra.mxu0 %v2263_v36 }
 0x73e   : > { %v1680_v46 = vpop.f32.mrb[24].mxu0 }
 0x73f   : > { %2198 = vmatmul.mubr.f32.vlgmr.msra.gmra.mrb[26].mxu0 %v1680_v46  ;;  %v2164_v47 = vpop.f32.mrb[25].mxu0 }
 0x812   : > { %v1773_v38 = vpop.f32.mrb[26].mxu0 }
 0x813   : > { %v1774_v42 = vadd.f32 %v2055_v53, %v1773_v38  ;;  %v2199_v45 = vpop.f32.mrb[27].mxu0 }
 0x815   : > { %v1777_v25 = vmax.f32 %v1774_v42, 0.0 }
 0x817   : > { %2217 = vmatmul.mubr.msk.f32.vlgmr.msra.gmra.mrb[16].mxu1 %vm1793_vm2, %v1777_v25 }
 0x8ea   : > { %v1863_v55 = vpop.f32.mrb[16].mxu1 }
 0x8eb   : > { %v1864_v50 = vadd.f32 %v2056_v54, %v1863_v55  ;;  %v2218_v51 = vpop.f32.mrb[17].mxu1 }
 0x8ed   : > { %v1868_v58 = vsel %vm1867_vm7, %v1864_v50, -inf }
 0x8ee   : > { %1869 = vmax.xlane.f32.xlu0 %v1868_v58 }
 0x97b   : > { %v1870_v59 = vpop.xlane.xlu0 %1869 }
 0x97c   : > { %v1871_v2 = vsub.f32 %v1864_v50, %v1870_v59 }
 0x97e   : > { %v1872_v3 = vmul.f32 1.442695, %v1871_v2 }
 0x980   : > { %2409 = vpow2.f32 %v1872_v3 }
 0x98a   : > { %v2410_v0 = vpop.eup %2409 }
 0x98b   : > { %v1874_v1 = vsel %vm1867_vm7, %v2410_v0, 0.0 }
 0x98c   : > { %1875 = vadd.xlane.f32.xlu1 %v1874_v1 }
 0xa19   : > { %v1876_v12 = vpop.xlane.xlu1 %1875 }
 0xa1a   : > { %2411 = vrcp.f32 %v1876_v12 }
 0xa24   : > { %v2412_v13 = vpop.eup %2411 }
 0xa25   : > { %v1878_v14 = vmul.f32 %v2412_v13, %v2410_v0 }
 0xa27   : > { %1879 = vst.msk [vmem:[%s443_s14] sm:$0xf] %vm1867_vm7, %v1878_v14 }
 0xa28 PF: > { %s3394_s15 = smov %s2761_s17  ;;  %p23_p10 = scmp.ge.s32.totalorder %s2761_s17, 4  }
 0xa29   : > { %s3395_s17 = smov %s2561_s18  ;;  %s3396_s18 = smov %s2565_s19 }
 0xa2a   : > { %s3397_s19 = smov %s2771_s16  ;;  %s3398_s20 = smov %s3394_s15 }
 0xa2b   :  { %25 = sbr.rel (!%p23_p10) target bundleno = 7 (0x7), region = 116 }
 0xa32   :  { %1899 = vsyncpa [#allocation3], 1 }
 0xa33   :  { %1901 = vsyncpa [#allocation3 + $0x1], 1 }
 0xa34   :  { %1902 = vsyncpa [#allocation5], 1 }
 0xa35   :  { %1903 = vsyncpa [#allocation8], 1 }

</bundles_post_ra>
